<compile_context>
chip_gen: v7x
topology: tpu7x:2x2x1
jax: 0.10.0
libtpu: 0.0.40
codegen_flags: <defaults>
</compile_context>

<pallas_src>
import jax
import jax.numpy as jnp
import numpy as np
from jax import lax
from jax.experimental import pallas as pl
from jax.experimental.pallas import tpu as pltpu


def _round_up(x, m):
    return ((x + m - 1) // m) * m


def _lstm_score_kernel(bmax_ref, emb_ref, len_ref, w_ih_ref, w_hh_ref, b_ref,
                       enc_ref, scores_ref, gx_scr, h_scr, c_scr):
    """Length-masked single-layer LSTM over one block of BBN sequences,
    followed by scores[bn] = <h_final[bn], enc[bn]>.

    bmax_ref  : (nblk,)      int32  SMEM scalar-prefetch: per-block max length
    emb_ref   : (L, BBN, E)  bf16   time-major embeddings
    len_ref   : (BBN, 1)     int32
    w_ih_ref  : (E, 4H)      bf16   i/f/o gate columns pre-scaled by 0.5
    w_hh_ref  : (H, 4H)      bf16   i/f/o gate columns pre-scaled by 0.5
    b_ref     : (1, 4H)      f32    i/f/o entries pre-scaled by 0.5
    enc_ref   : (BBN, H)     f32
    scores_ref: (BBN, 1)     f32
    gx_scr    : (L, BBN, 4H) f32    hoisted input-projection gates
    h_scr/c_scr:(BBN, H)     f32    LSTM state
    """
    BBN, H = h_scr.shape
    L = emb_ref.shape[0]
    G = 4 * H
    bmax = bmax_ref[pl.program_id(0)]          # per-block time bound (SMEM scalar)
    unroll = True if L <= 16 else 8            # cap unroll for long sequences

    h_scr[...] = jnp.zeros_like(h_scr)
    c_scr[...] = jnp.zeros_like(c_scr)

    # Hoisted once (broadcasts are not CSE'd inside loops).
    bias_b = jnp.broadcast_to(b_ref[...], (BBN, G))
    lens_b = jnp.broadcast_to(len_ref[...], (BBN, H))

    # --- Hoisted input projection: off the serial critical path.  One small
    # (BBN, E) @ (E, 4H) bf16 MXU matmul per *valid* time step.
    def proj(l, carry):
        @pl.when(l < bmax)
        def _():
            gx_scr[l] = (jnp.dot(emb_ref[l], w_ih_ref[...],
                                 preferred_element_type=jnp.float32) + bias_b)
        return carry

    lax.fori_loop(0, L, proj, 0, unroll=unroll)

    # --- Serial recurrence: per step one tiny (BBN,H)@(H,4H) recurrent matmul
    # plus ONE full-width tanh over all four gates (sigmoid folded into tanh
    # via the 0.5 pre-scale of the i/f/o weight columns) and tanh(c_new).
    def step(t, carry):
        @pl.when(t < bmax)                      # skip fully padded time steps
        def _():
            # NOTE: per-step bf16 cast of h adds ~3e-3 relative rounding that
            # compounds with L; fine at small L, use an f32 dot for long seqs.
            gates = gx_scr[t] + jnp.dot(h_scr[...].astype(jnp.bfloat16),
                                        w_hh_ref[...],
                                        preferred_element_type=jnp.float32)
            act = jnp.tanh(gates)               # one EUP pass over (BBN, 4H)
            # PyTorch LSTM gate order i, f, g, o;  sigmoid(x)=0.5*tanh(x/2)+0.5
            i_g = 0.5 * act[:, 0 * H:1 * H] + 0.5
            f_g = 0.5 * act[:, 1 * H:2 * H] + 0.5
            g_g = act[:, 2 * H:3 * H]
            o_g = 0.5 * act[:, 3 * H:4 * H] + 0.5
            c_new = f_g * c_scr[...] + i_g * g_g
            h_new = o_g * jnp.tanh(c_new)
            # Only advance state while t < length (== pack_padded_sequence h_n).
            valid = t < lens_b                  # (BBN, H)
            h_scr[...] = jnp.where(valid, h_new, h_scr[...])
            c_scr[...] = jnp.where(valid, c_new, c_scr[...])
        return carry

    lax.fori_loop(0, L, step, 0, unroll=unroll)

    # scores = sum(options_feat * encoder_output, -1)
    scores_ref[...] = jnp.sum(h_scr[...] * enc_ref[...], axis=-1, keepdims=True)


def _prescale_ifo(w, H):
    """Scale the i/f/o gate columns by 0.5 (exact in binary) so the kernel can
    compute their sigmoid as 0.5*tanh(.)+0.5 with one full-width tanh."""
    scale = jnp.array([0.5, 0.5, 1.0, 0.5], w.dtype).reshape(1, 4, 1)
    return (w.reshape(w.shape[0], 4, H) * scale).reshape(w.shape[0], 4 * H)


def lstm_scores(emb_tm, lengths, w_ih, w_hh, b, enc_rep, *, block_bn=256):
    """emb_tm: (L, BN, E) time-major; lengths: (BN,) int; w_ih: (E, 4H);
    w_hh: (H, 4H); b: (1, 4H); enc_rep: (BN, H).  Returns (BN,) f32 scores."""
    L, BN, E = emb_tm.shape
    H = w_hh.shape[0]
    G = 4 * H

    # MXU operands in bf16 (the 0.5 scale is exact, so no extra rounding);
    # bias, gates, activations, h/c state and the score math stay f32.
    w_ih_p = _prescale_ifo(w_ih.astype(jnp.float32), H).astype(jnp.bfloat16)
    w_hh_p = _prescale_ifo(w_hh.astype(jnp.float32), H).astype(jnp.bfloat16)
    b_p = _prescale_ifo(b.astype(jnp.float32), H)

    # Block size over BN: prefer >=2 blocks when BN allows (v7x: 2 TensorCores
    # share the "parallel" grid axis), up to 256 rows (fills the 256-wide MXU
    # on v6e/v7x; harmless on v5e), then clamp to a ~12 MiB VMEM working set
    # (fits v5e's 16 MiB scoped default; well under v7x's 64 MiB physical).
    BBN = min(block_bn, max(16, _round_up(pl.cdiv(BN, 2), 16)))

    def vmem_bytes(bbn):
        e_pad = _round_up(E, 128)
        g_pad = _round_up(G, 128)
        h_pad = _round_up(H, 128)
        gx = L * bbn * g_pad * 4                     # f32 gate scratch
        emb = 2 * L * bbn * e_pad * 2                # double-buffered bf16 input
        state = 4 * bbn * h_pad * 4                  # h, c, enc (x2 buffers)
        w = (e_pad + h_pad) * g_pad * 2 + g_pad * 8  # weights + bias
        return gx + emb + state + w

    while BBN > 16 and vmem_bytes(BBN) > (12 << 20):
        BBN = max(16, _round_up(BBN // 2, 16))

    BN_pad = _round_up(BN, BBN)
    nblk = BN_pad // BBN

    # Gathered embeddings consumed directly in (L, BN, E) time-major layout —
    # no block-major transpose copy in HBM.
    emb_p = jnp.pad(emb_tm.astype(jnp.bfloat16),
                    ((0, 0), (0, BN_pad - BN), (0, 0)))          # (L, BN_pad, E)
    enc_p = jnp.pad(enc_rep.astype(jnp.float32),
                    ((0, BN_pad - BN), (0, 0)))                  # (BN_pad, H)
    len_flat = jnp.pad(lengths.astype(jnp.int32), (0, BN_pad - BN))
    blk_max = jnp.max(len_flat.reshape(nblk, BBN), axis=1)       # (nblk,) int32
    len_p = len_flat[:, None]                                    # (BN_pad, 1)

    scores = pl.pallas_call(
        _lstm_score_kernel,
        out_shape=jax.ShapeDtypeStruct((BN_pad, 1), jnp.float32),
        grid_spec=pltpu.PrefetchScalarGridSpec(
            num_scalar_prefetch=1,
            grid=(nblk,),
            in_specs=[
                pl.BlockSpec((L, BBN, E), lambda i, bm: (0, i, 0)),
                pl.BlockSpec((BBN, 1), lambda i, bm: (i, 0)),
                pl.BlockSpec((E, G), lambda i, bm: (0, 0)),
                pl.BlockSpec((H, G), lambda i, bm: (0, 0)),
                pl.BlockSpec((1, G), lambda i, bm: (0, 0)),
                pl.BlockSpec((BBN, H), lambda i, bm: (i, 0)),
            ],
            out_specs=pl.BlockSpec((BBN, 1), lambda i, bm: (i, 0)),
            scratch_shapes=[
                pltpu.VMEM((L, BBN, G), jnp.float32),    # hoisted input gates
                pltpu.VMEM((BBN, H), jnp.float32),       # h state
                pltpu.VMEM((BBN, H), jnp.float32),       # c state
            ]),
        compiler_params=pltpu.CompilerParams(
            dimension_semantics=("parallel",),
            vmem_limit_bytes=32 << 20),
    )(blk_max, emb_p, len_p, w_ih_p, w_hh_p, b_p, enc_p)
    return scores[:BN, 0]


def disc_qt_decoder_head(encoder_output, options, opt_len, qt_idx, opt_idx,
                         word_embed, w_ih, w_hh, b, rel_table):
    """JAX/Pallas equivalent of DiscQtDecoderHead.forward."""
    B, N, L = options.shape
    flat_opt = options.reshape(B * N, L)
    flat_len = opt_len.reshape(B * N).astype(jnp.int32)

    # Glue: embedding gather directly in time-major layout and encoder repeat.
    # TODO(synk): gather/encoder-repeat could be folded into the kernel via
    # scalar-prefetched token ids + memory_space=pl.ANY DMA for very large BN*L.
    emb_tm = word_embed[flat_opt.T]                      # (L, BN, E)
    enc_rep = jnp.repeat(encoder_output, N, axis=0)      # unsqueeze+repeat -> (BN, H)

    scores = lstm_scores(emb_tm, flat_len, w_ih, w_hh, b, enc_rep).reshape(B, N)

    # TODO(synk): original reads data/qt_scores.json + data/qt_count.json;
    # replaced by a deterministic synthetic relevance table lookup.
    qt_score = rel_table[qt_idx[:, None], opt_idx].astype(scores.dtype)
    return scores, qt_score


def _reference_scores(emb, lengths, w_ih, w_hh, b, enc_rep):
    """Pure-JAX f32 reference for the in-kernel math (correctness check)."""
    BN, L, E = emb.shape
    H = w_hh.shape[0]
    h = jnp.zeros((BN, H), jnp.float32)
    c = jnp.zeros((BN, H), jnp.float32)
    for t in range(L):
        gates = emb[:, t] @ w_ih + h @ w_hh + b
        i = jax.nn.sigmoid(gates[:, :H])
        f = jax.nn.sigmoid(gates[:, H:2 * H])
        g = jnp.tanh(gates[:, 2 * H:3 * H])
        o = jax.nn.sigmoid(gates[:, 3 * H:])
        c_new = f * c + i * g
        h_new = o * jnp.tanh(c_new)
        valid = (t < lengths)[:, None]
        h = jnp.where(valid, h_new, h)
        c = jnp.where(valid, c_new, c)
    return jnp.sum(h * enc_rep, axis=-1)


if __name__ == "__main__":
    # Small config consistent with the module:
    #   word_embedding_size=32, lstm_hidden_size=32, lstm_num_layers=1, dropout=0
    B, N, L = 2, 4, 8          # batch, num_options, max_sequence_length
    VOCAB, E, H = 40, 32, 32
    PAD = 0
    NUM_QT, OPT_SPACE = 5, 50

    key = jax.random.PRNGKey(0)
    ks = jax.random.split(key, 10)

    # Parameters (deterministic synthetic init)
    word_embed = jax.random.normal(ks[0], (VOCAB, E), jnp.float32) * 0.1
    word_embed = word_embed.at[PAD].set(0.0)                 # padding_idx
    w_ih = jax.random.normal(ks[1], (E, 4 * H), jnp.float32) * 0.1
    w_hh = jax.random.normal(ks[2], (H, 4 * H), jnp.float32) * 0.1
    b = jax.random.normal(ks[3], (1, 4 * H), jnp.float32) * 0.1   # b_ih + b_hh folded
    # NOTE: self.a2a (Linear 2H->H) exists in __init__ but is unused in forward.

    # Inputs
    options = jax.random.randint(ks[4], (B, N, L), 1, VOCAB)
    opt_len = jax.random.randint(ks[5], (B, N), 2, L + 1)
    encoder_output = jax.random.normal(ks[6], (B, H), jnp.float32)
    qt_idx = jax.random.randint(ks[7], (B,), 0, NUM_QT)
    opt_idx = jax.random.randint(ks[8], (B, N), 0, OPT_SPACE)
    rel_table = jax.random.uniform(ks[9], (NUM_QT, OPT_SPACE)) < 0.3

    scores, qt_score = disc_qt_decoder_head(
        encoder_output, options, opt_len, qt_idx, opt_idx,
        word_embed, w_ih, w_hh, b, rel_table)
    scores = jax.block_until_ready(scores)
    qt_score = jax.block_until_ready(qt_score)

    # Correctness check against a pure-JAX f32 reference of the same math.
    # (Kernel uses bf16 MXU operands with f32 accumulation, so tolerance is
    #  loosened relative to an all-f32 check.)
    flat_opt = options.reshape(B * N, L)
    flat_len = opt_len.reshape(B * N).astype(jnp.int32)
    emb = word_embed[flat_opt]
    enc_rep = jnp.repeat(encoder_output, N, axis=0)
    ref = _reference_scores(emb, flat_len, w_ih, w_hh, b, enc_rep).reshape(B, N)
    np.testing.assert_allclose(np.asarray(scores), np.asarray(ref),
                               rtol=2e-2, atol=2e-2)
    assert scores.shape == (B, N) and qt_score.shape == (B, N)

    print("KERNEL_OK")
</pallas_src>

<mosaic_0001>
module attributes {stable_mosaic.version = 11 : i64} {
  func.func @_lstm_score_kernel(%arg0: i32, %arg1: memref<1xi32, #tpu.memory_space<smem>>, %arg2: memref<8x16x32xbf16, #tpu.memory_space<vmem>>, %arg3: memref<16x1xi32, #tpu.memory_space<vmem>>, %arg4: memref<32x128xbf16, #tpu.memory_space<vmem>>, %arg5: memref<32x128xbf16, #tpu.memory_space<vmem>>, %arg6: memref<1x128xf32, #tpu.memory_space<vmem>>, %arg7: memref<16x32xf32, #tpu.memory_space<vmem>>, %arg8: memref<16x1xf32, #tpu.memory_space<vmem>>, %arg9: memref<8x16x128xf32, #tpu.memory_space<vmem>>, %arg10: memref<16x32xf32, #tpu.memory_space<vmem>>, %arg11: memref<16x32xf32, #tpu.memory_space<vmem>>) attributes {dimension_semantics = [#tpu.dimension_semantics<parallel>], iteration_bounds = array<i64: 1>, scalar_prefetch = 1 : i64, scratch_operands = 3 : i64, tpu.core_type = #tpu.core_type<tc>, window_params = [{transform_indices = @transform_0, window_bounds = array<i64: 8, 16, 32>}, {transform_indices = @transform_1, window_bounds = array<i64: 16, 1>}, {pipeline_mode = #tpu.pipeline_mode<synchronous>, transform_indices = @transform_2, window_bounds = array<i64: 32, 128>}, {pipeline_mode = #tpu.pipeline_mode<synchronous>, transform_indices = @transform_3, window_bounds = array<i64: 32, 128>}, {pipeline_mode = #tpu.pipeline_mode<synchronous>, transform_indices = @transform_4, window_bounds = array<i64: 1, 128>}, {transform_indices = @transform_5, window_bounds = array<i64: 16, 32>}, {transform_indices = @transform_6, window_bounds = array<i64: 16, 1>}]} {
    %0 = arith.index_cast %arg0 : i32 to index
    %1 = memref.load %arg1[%0] : memref<1xi32, #tpu.memory_space<smem>>
    %cst = arith.constant 0.000000e+00 : f32
    %2 = vector.broadcast %cst : f32 to vector<16x32xf32>
    %c0 = arith.constant 0 : index
    %c0_0 = arith.constant 0 : index
    %3 = vector.load %arg10[%c0, %c0_0] : memref<16x32xf32, #tpu.memory_space<vmem>>, vector<16x32xf32>
    tpu.vector_store %arg10[%c0, %c0_0], %2 {strides = array<i32>} : memref<16x32xf32, #tpu.memory_space<vmem>>, vector<16x32xf32>,
    %cst_1 = arith.constant 0.000000e+00 : f32
    %4 = vector.broadcast %cst_1 : f32 to vector<16x32xf32>
    %c0_2 = arith.constant 0 : index
    %c0_3 = arith.constant 0 : index
    %5 = vector.load %arg11[%c0_2, %c0_3] : memref<16x32xf32, #tpu.memory_space<vmem>>, vector<16x32xf32>
    tpu.vector_store %arg11[%c0_2, %c0_3], %4 {strides = array<i32>} : memref<16x32xf32, #tpu.memory_space<vmem>>, vector<16x32xf32>,
    %c0_4 = arith.constant 0 : index
    %c0_5 = arith.constant 0 : index
    %6 = vector.load %arg6[%c0_4, %c0_5] : memref<1x128xf32, #tpu.memory_space<vmem>>, vector<1x128xf32>
    %7 = vector.shape_cast %6 : vector<1x128xf32> to vector<1x128xf32>
    %8 = vector.broadcast %7 : vector<1x128xf32> to vector<16x128xf32>
    %c0_6 = arith.constant 0 : index
    %c0_7 = arith.constant 0 : index
    %9 = vector.load %arg3[%c0_6, %c0_7] : memref<16x1xi32, #tpu.memory_space<vmem>>, vector<16x1xi32>
    %10 = vector.shape_cast %9 : vector<16x1xi32> to vector<16x1xi32>
    %11 = vector.broadcast %10 : vector<16x1xi32> to vector<16x32xi32>
    %c0_i32 = arith.constant 0 : i32
    %12 = arith.cmpi slt, %c0_i32, %1 : i32
    %13 = arith.extui %12 : i1 to i32
    %c0_i32_8 = arith.constant 0 : i32
    %14 = arith.cmpi ne, %13, %c0_i32_8 : i32
    scf.if %14 {
      %66 = arith.index_cast %c0_i32 : i32 to index
      %c0_40 = arith.constant 0 : index
      %c0_41 = arith.constant 0 : index
      %67 = vector.load %arg2[%66, %c0_40, %c0_41] : memref<8x16x32xbf16, #tpu.memory_space<vmem>>, vector<1x16x32xbf16>
      %68 = vector.shape_cast %67 : vector<1x16x32xbf16> to vector<16x32xbf16>
      %c0_42 = arith.constant 0 : index
      %c0_43 = arith.constant 0 : index
      %69 = vector.load %arg4[%c0_42, %c0_43] : memref<32x128xbf16, #tpu.memory_space<vmem>>, vector<32x128xbf16>
      %cst_44 = arith.constant dense<0.000000e+00> : vector<16x128xf32>
      %70 = tpu.matmul %68, %69, %cst_44 {dimension_numbers = #tpu.dot_dimension_numbers<[1], [0], [0], [1], [0, 0, 1, 1], [], []>} : vector<16x32xbf16>, vector<32x128xbf16>, vector<16x128xf32> -> vector<16x128xf32>
      %71 = arith.addf %70, %8 : vector<16x128xf32>
      %72 = arith.index_cast %c0_i32 : i32 to index
      %c0_45 = arith.constant 0 : index
      %c0_46 = arith.constant 0 : index
      %73 = vector.load %arg9[%72, %c0_45, %c0_46] : memref<8x16x128xf32, #tpu.memory_space<vmem>>, vector<1x16x128xf32>
      %74 = vector.shape_cast %73 : vector<1x16x128xf32> to vector<16x128xf32>
      %75 = vector.shape_cast %71 : vector<16x128xf32> to vector<1x16x128xf32>
      tpu.vector_store %arg9[%72, %c0_45, %c0_46], %75 {strides = array<i32>} : memref<8x16x128xf32, #tpu.memory_space<vmem>>, vector<1x16x128xf32>,
    } else {
    }
    %c1_i32 = arith.constant 1 : i32
    %15 = arith.cmpi slt, %c1_i32, %1 : i32
    %16 = arith.extui %15 : i1 to i32
    %c0_i32_9 = arith.constant 0 : i32
    %17 = arith.cmpi ne, %16, %c0_i32_9 : i32
    scf.if %17 {
      %66 = arith.index_cast %c1_i32 : i32 to index
      %c0_40 = arith.constant 0 : index
      %c0_41 = arith.constant 0 : index
      %67 = vector.load %arg2[%66, %c0_40, %c0_41] : memref<8x16x32xbf16, #tpu.memory_space<vmem>>, vector<1x16x32xbf16>
      %68 = vector.shape_cast %67 : vector<1x16x32xbf16> to vector<16x32xbf16>
      %c0_42 = arith.constant 0 : index
      %c0_43 = arith.constant 0 : index
      %69 = vector.load %arg4[%c0_42, %c0_43] : memref<32x128xbf16, #tpu.memory_space<vmem>>, vector<32x128xbf16>
      %cst_44 = arith.constant dense<0.000000e+00> : vector<16x128xf32>
      %70 = tpu.matmul %68, %69, %cst_44 {dimension_numbers = #tpu.dot_dimension_numbers<[1], [0], [0], [1], [0, 0, 1, 1], [], []>} : vector<16x32xbf16>, vector<32x128xbf16>, vector<16x128xf32> -> vector<16x128xf32>
      %71 = arith.addf %70, %8 : vector<16x128xf32>
      %72 = arith.index_cast %c1_i32 : i32 to index
      %c0_45 = arith.constant 0 : index
      %c0_46 = arith.constant 0 : index
      %73 = vector.load %arg9[%72, %c0_45, %c0_46] : memref<8x16x128xf32, #tpu.memory_space<vmem>>, vector<1x16x128xf32>
      %74 = vector.shape_cast %73 : vector<1x16x128xf32> to vector<16x128xf32>
      %75 = vector.shape_cast %71 : vector<16x128xf32> to vector<1x16x128xf32>
      tpu.vector_store %arg9[%72, %c0_45, %c0_46], %75 {strides = array<i32>} : memref<8x16x128xf32, #tpu.memory_space<vmem>>, vector<1x16x128xf32>,
    } else {
    }
    %c2_i32 = arith.constant 2 : i32
    %18 = arith.cmpi slt, %c2_i32, %1 : i32
    %19 = arith.extui %18 : i1 to i32
    %c0_i32_10 = arith.constant 0 : i32
    %20 = arith.cmpi ne, %19, %c0_i32_10 : i32
    scf.if %20 {
      %66 = arith.index_cast %c2_i32 : i32 to index
      %c0_40 = arith.constant 0 : index
      %c0_41 = arith.constant 0 : index
      %67 = vector.load %arg2[%66, %c0_40, %c0_41] : memref<8x16x32xbf16, #tpu.memory_space<vmem>>, vector<1x16x32xbf16>
      %68 = vector.shape_cast %67 : vector<1x16x32xbf16> to vector<16x32xbf16>
      %c0_42 = arith.constant 0 : index
      %c0_43 = arith.constant 0 : index
      %69 = vector.load %arg4[%c0_42, %c0_43] : memref<32x128xbf16, #tpu.memory_space<vmem>>, vector<32x128xbf16>
      %cst_44 = arith.constant dense<0.000000e+00> : vector<16x128xf32>
      %70 = tpu.matmul %68, %69, %cst_44 {dimension_numbers = #tpu.dot_dimension_numbers<[1], [0], [0], [1], [0, 0, 1, 1], [], []>} : vector<16x32xbf16>, vector<32x128xbf16>, vector<16x128xf32> -> vector<16x128xf32>
      %71 = arith.addf %70, %8 : vector<16x128xf32>
      %72 = arith.index_cast %c2_i32 : i32 to index
      %c0_45 = arith.constant 0 : index
      %c0_46 = arith.constant 0 : index
      %73 = vector.load %arg9[%72, %c0_45, %c0_46] : memref<8x16x128xf32, #tpu.memory_space<vmem>>, vector<1x16x128xf32>
      %74 = vector.shape_cast %73 : vector<1x16x128xf32> to vector<16x128xf32>
      %75 = vector.shape_cast %71 : vector<16x128xf32> to vector<1x16x128xf32>
      tpu.vector_store %arg9[%72, %c0_45, %c0_46], %75 {strides = array<i32>} : memref<8x16x128xf32, #tpu.memory_space<vmem>>, vector<1x16x128xf32>,
    } else {
    }
    %c3_i32 = arith.constant 3 : i32
    %21 = arith.cmpi slt, %c3_i32, %1 : i32
    %22 = arith.extui %21 : i1 to i32
    %c0_i32_11 = arith.constant 0 : i32
    %23 = arith.cmpi ne, %22, %c0_i32_11 : i32
    scf.if %23 {
      %66 = arith.index_cast %c3_i32 : i32 to index
      %c0_40 = arith.constant 0 : index
      %c0_41 = arith.constant 0 : index
      %67 = vector.load %arg2[%66, %c0_40, %c0_41] : memref<8x16x32xbf16, #tpu.memory_space<vmem>>, vector<1x16x32xbf16>
      %68 = vector.shape_cast %67 : vector<1x16x32xbf16> to vector<16x32xbf16>
      %c0_42 = arith.constant 0 : index
      %c0_43 = arith.constant 0 : index
      %69 = vector.load %arg4[%c0_42, %c0_43] : memref<32x128xbf16, #tpu.memory_space<vmem>>, vector<32x128xbf16>
      %cst_44 = arith.constant dense<0.000000e+00> : vector<16x128xf32>
      %70 = tpu.matmul %68, %69, %cst_44 {dimension_numbers = #tpu.dot_dimension_numbers<[1], [0], [0], [1], [0, 0, 1, 1], [], []>} : vector<16x32xbf16>, vector<32x128xbf16>, vector<16x128xf32> -> vector<16x128xf32>
      %71 = arith.addf %70, %8 : vector<16x128xf32>
      %72 = arith.index_cast %c3_i32 : i32 to index
      %c0_45 = arith.constant 0 : index
      %c0_46 = arith.constant 0 : index
      %73 = vector.load %arg9[%72, %c0_45, %c0_46] : memref<8x16x128xf32, #tpu.memory_space<vmem>>, vector<1x16x128xf32>
      %74 = vector.shape_cast %73 : vector<1x16x128xf32> to vector<16x128xf32>
      %75 = vector.shape_cast %71 : vector<16x128xf32> to vector<1x16x128xf32>
      tpu.vector_store %arg9[%72, %c0_45, %c0_46], %75 {strides = array<i32>} : memref<8x16x128xf32, #tpu.memory_space<vmem>>, vector<1x16x128xf32>,
    } else {
    }
    %c4_i32 = arith.constant 4 : i32
    %24 = arith.cmpi slt, %c4_i32, %1 : i32
    %25 = arith.extui %24 : i1 to i32
    %c0_i32_12 = arith.constant 0 : i32
    %26 = arith.cmpi ne, %25, %c0_i32_12 : i32
    scf.if %26 {
      %66 = arith.index_cast %c4_i32 : i32 to index
      %c0_40 = arith.constant 0 : index
      %c0_41 = arith.constant 0 : index
      %67 = vector.load %arg2[%66, %c0_40, %c0_41] : memref<8x16x32xbf16, #tpu.memory_space<vmem>>, vector<1x16x32xbf16>
      %68 = vector.shape_cast %67 : vector<1x16x32xbf16> to vector<16x32xbf16>
      %c0_42 = arith.constant 0 : index
      %c0_43 = arith.constant 0 : index
      %69 = vector.load %arg4[%c0_42, %c0_43] : memref<32x128xbf16, #tpu.memory_space<vmem>>, vector<32x128xbf16>
      %cst_44 = arith.constant dense<0.000000e+00> : vector<16x128xf32>
      %70 = tpu.matmul %68, %69, %cst_44 {dimension_numbers = #tpu.dot_dimension_numbers<[1], [0], [0], [1], [0, 0, 1, 1], [], []>} : vector<16x32xbf16>, vector<32x128xbf16>, vector<16x128xf32> -> vector<16x128xf32>
      %71 = arith.addf %70, %8 : vector<16x128xf32>
      %72 = arith.index_cast %c4_i32 : i32 to index
      %c0_45 = arith.constant 0 : index
      %c0_46 = arith.constant 0 : index
      %73 = vector.load %arg9[%72, %c0_45, %c0_46] : memref<8x16x128xf32, #tpu.memory_space<vmem>>, vector<1x16x128xf32>
      %74 = vector.shape_cast %73 : vector<1x16x128xf32> to vector<16x128xf32>
      %75 = vector.shape_cast %71 : vector<16x128xf32> to vector<1x16x128xf32>
      tpu.vector_store %arg9[%72, %c0_45, %c0_46], %75 {strides = array<i32>} : memref<8x16x128xf32, #tpu.memory_space<vmem>>, vector<1x16x128xf32>,
    } else {
    }
    %c5_i32 = arith.constant 5 : i32
    %27 = arith.cmpi slt, %c5_i32, %1 : i32
    %28 = arith.extui %27 : i1 to i32
    %c0_i32_13 = arith.constant 0 : i32
    %29 = arith.cmpi ne, %28, %c0_i32_13 : i32
    scf.if %29 {
      %66 = arith.index_cast %c5_i32 : i32 to index
      %c0_40 = arith.constant 0 : index
      %c0_41 = arith.constant 0 : index
      %67 = vector.load %arg2[%66, %c0_40, %c0_41] : memref<8x16x32xbf16, #tpu.memory_space<vmem>>, vector<1x16x32xbf16>
      %68 = vector.shape_cast %67 : vector<1x16x32xbf16> to vector<16x32xbf16>
      %c0_42 = arith.constant 0 : index
      %c0_43 = arith.constant 0 : index
      %69 = vector.load %arg4[%c0_42, %c0_43] : memref<32x128xbf16, #tpu.memory_space<vmem>>, vector<32x128xbf16>
      %cst_44 = arith.constant dense<0.000000e+00> : vector<16x128xf32>
      %70 = tpu.matmul %68, %69, %cst_44 {dimension_numbers = #tpu.dot_dimension_numbers<[1], [0], [0], [1], [0, 0, 1, 1], [], []>} : vector<16x32xbf16>, vector<32x128xbf16>, vector<16x128xf32> -> vector<16x128xf32>
      %71 = arith.addf %70, %8 : vector<16x128xf32>
      %72 = arith.index_cast %c5_i32 : i32 to index
      %c0_45 = arith.constant 0 : index
      %c0_46 = arith.constant 0 : index
      %73 = vector.load %arg9[%72, %c0_45, %c0_46] : memref<8x16x128xf32, #tpu.memory_space<vmem>>, vector<1x16x128xf32>
      %74 = vector.shape_cast %73 : vector<1x16x128xf32> to vector<16x128xf32>
      %75 = vector.shape_cast %71 : vector<16x128xf32> to vector<1x16x128xf32>
      tpu.vector_store %arg9[%72, %c0_45, %c0_46], %75 {strides = array<i32>} : memref<8x16x128xf32, #tpu.memory_space<vmem>>, vector<1x16x128xf32>,
    } else {
    }
    %c6_i32 = arith.constant 6 : i32
    %30 = arith.cmpi slt, %c6_i32, %1 : i32
    %31 = arith.extui %30 : i1 to i32
    %c0_i32_14 = arith.constant 0 : i32
    %32 = arith.cmpi ne, %31, %c0_i32_14 : i32
    scf.if %32 {
      %66 = arith.index_cast %c6_i32 : i32 to index
      %c0_40 = arith.constant 0 : index
      %c0_41 = arith.constant 0 : index
      %67 = vector.load %arg2[%66, %c0_40, %c0_41] : memref<8x16x32xbf16, #tpu.memory_space<vmem>>, vector<1x16x32xbf16>
      %68 = vector.shape_cast %67 : vector<1x16x32xbf16> to vector<16x32xbf16>
      %c0_42 = arith.constant 0 : index
      %c0_43 = arith.constant 0 : index
      %69 = vector.load %arg4[%c0_42, %c0_43] : memref<32x128xbf16, #tpu.memory_space<vmem>>, vector<32x128xbf16>
      %cst_44 = arith.constant dense<0.000000e+00> : vector<16x128xf32>
      %70 = tpu.matmul %68, %69, %cst_44 {dimension_numbers = #tpu.dot_dimension_numbers<[1], [0], [0], [1], [0, 0, 1, 1], [], []>} : vector<16x32xbf16>, vector<32x128xbf16>, vector<16x128xf32> -> vector<16x128xf32>
      %71 = arith.addf %70, %8 : vector<16x128xf32>
      %72 = arith.index_cast %c6_i32 : i32 to index
      %c0_45 = arith.constant 0 : index
      %c0_46 = arith.constant 0 : index
      %73 = vector.load %arg9[%72, %c0_45, %c0_46] : memref<8x16x128xf32, #tpu.memory_space<vmem>>, vector<1x16x128xf32>
      %74 = vector.shape_cast %73 : vector<1x16x128xf32> to vector<16x128xf32>
      %75 = vector.shape_cast %71 : vector<16x128xf32> to vector<1x16x128xf32>
      tpu.vector_store %arg9[%72, %c0_45, %c0_46], %75 {strides = array<i32>} : memref<8x16x128xf32, #tpu.memory_space<vmem>>, vector<1x16x128xf32>,
    } else {
    }
    %c7_i32 = arith.constant 7 : i32
    %33 = arith.cmpi slt, %c7_i32, %1 : i32
    %34 = arith.extui %33 : i1 to i32
    %c0_i32_15 = arith.constant 0 : i32
    %35 = arith.cmpi ne, %34, %c0_i32_15 : i32
    scf.if %35 {
      %66 = arith.index_cast %c7_i32 : i32 to index
      %c0_40 = arith.constant 0 : index
      %c0_41 = arith.constant 0 : index
      %67 = vector.load %arg2[%66, %c0_40, %c0_41] : memref<8x16x32xbf16, #tpu.memory_space<vmem>>, vector<1x16x32xbf16>
      %68 = vector.shape_cast %67 : vector<1x16x32xbf16> to vector<16x32xbf16>
      %c0_42 = arith.constant 0 : index
      %c0_43 = arith.constant 0 : index
      %69 = vector.load %arg4[%c0_42, %c0_43] : memref<32x128xbf16, #tpu.memory_space<vmem>>, vector<32x128xbf16>
      %cst_44 = arith.constant dense<0.000000e+00> : vector<16x128xf32>
      %70 = tpu.matmul %68, %69, %cst_44 {dimension_numbers = #tpu.dot_dimension_numbers<[1], [0], [0], [1], [0, 0, 1, 1], [], []>} : vector<16x32xbf16>, vector<32x128xbf16>, vector<16x128xf32> -> vector<16x128xf32>
      %71 = arith.addf %70, %8 : vector<16x128xf32>
      %72 = arith.index_cast %c7_i32 : i32 to index
      %c0_45 = arith.constant 0 : index
      %c0_46 = arith.constant 0 : index
      %73 = vector.load %arg9[%72, %c0_45, %c0_46] : memref<8x16x128xf32, #tpu.memory_space<vmem>>, vector<1x16x128xf32>
      %74 = vector.shape_cast %73 : vector<1x16x128xf32> to vector<16x128xf32>
      %75 = vector.shape_cast %71 : vector<16x128xf32> to vector<1x16x128xf32>
      tpu.vector_store %arg9[%72, %c0_45, %c0_46], %75 {strides = array<i32>} : memref<8x16x128xf32, #tpu.memory_space<vmem>>, vector<1x16x128xf32>,
    } else {
    }
    %c8_i32 = arith.constant 8 : i32
    %c0_i32_16 = arith.constant 0 : i32
    %36 = arith.cmpi slt, %c0_i32_16, %1 : i32
    %37 = arith.extui %36 : i1 to i32
    %c0_i32_17 = arith.constant 0 : i32
    %38 = arith.cmpi ne, %37, %c0_i32_17 : i32
    scf.if %38 {
      %66 = arith.index_cast %c0_i32_16 : i32 to index
      %c0_40 = arith.constant 0 : index
      %c0_41 = arith.constant 0 : index
      %67 = vector.load %arg9[%66, %c0_40, %c0_41] : memref<8x16x128xf32, #tpu.memory_space<vmem>>, vector<1x16x128xf32>
      %68 = vector.shape_cast %67 : vector<1x16x128xf32> to vector<16x128xf32>
      %c0_42 = arith.constant 0 : index
      %c0_43 = arith.constant 0 : index
      %69 = vector.load %arg10[%c0_42, %c0_43] : memref<16x32xf32, #tpu.memory_space<vmem>>, vector<16x32xf32>
      %70 = arith.truncf %69 : vector<16x32xf32> to vector<16x32xbf16>
      %c0_44 = arith.constant 0 : index
      %c0_45 = arith.constant 0 : index
      %71 = vector.load %arg5[%c0_44, %c0_45] : memref<32x128xbf16, #tpu.memory_space<vmem>>, vector<32x128xbf16>
      %cst_46 = arith.constant dense<0.000000e+00> : vector<16x128xf32>
      %72 = tpu.matmul %70, %71, %cst_46 {dimension_numbers = #tpu.dot_dimension_numbers<[1], [0], [0], [1], [0, 0, 1, 1], [], []>} : vector<16x32xbf16>, vector<32x128xbf16>, vector<16x128xf32> -> vector<16x128xf32>
      %73 = arith.addf %68, %72 : vector<16x128xf32>
      %74 = math.tanh %73 : vector<16x128xf32>
      %75 = vector.extract_strided_slice %74 {offsets = [0, 0], sizes = [16, 32], strides = [1, 1]} : vector<16x128xf32> to vector<16x32xf32>
      %cst_47 = arith.constant 5.000000e-01 : f32
      %76 = vector.broadcast %cst_47 : f32 to vector<16x32xf32>
      %77 = arith.mulf %76, %75 : vector<16x32xf32>
      %cst_48 = arith.constant 5.000000e-01 : f32
      %78 = vector.broadcast %cst_48 : f32 to vector<16x32xf32>
      %79 = arith.addf %77, %78 : vector<16x32xf32>
      %80 = vector.extract_strided_slice %74 {offsets = [0, 32], sizes = [16, 32], strides = [1, 1]} : vector<16x128xf32> to vector<16x32xf32>
      %cst_49 = arith.constant 5.000000e-01 : f32
      %81 = vector.broadcast %cst_49 : f32 to vector<16x32xf32>
      %82 = arith.mulf %81, %80 : vector<16x32xf32>
      %cst_50 = arith.constant 5.000000e-01 : f32
      %83 = vector.broadcast %cst_50 : f32 to vector<16x32xf32>
      %84 = arith.addf %82, %83 : vector<16x32xf32>
      %85 = vector.extract_strided_slice %74 {offsets = [0, 64], sizes = [16, 32], strides = [1, 1]} : vector<16x128xf32> to vector<16x32xf32>
      %86 = vector.extract_strided_slice %74 {offsets = [0, 96], sizes = [16, 32], strides = [1, 1]} : vector<16x128xf32> to vector<16x32xf32>
      %cst_51 = arith.constant 5.000000e-01 : f32
      %87 = vector.broadcast %cst_51 : f32 to vector<16x32xf32>
      %88 = arith.mulf %87, %86 : vector<16x32xf32>
      %cst_52 = arith.constant 5.000000e-01 : f32
      %89 = vector.broadcast %cst_52 : f32 to vector<16x32xf32>
      %90 = arith.addf %88, %89 : vector<16x32xf32>
      %c0_53 = arith.constant 0 : index
      %c0_54 = arith.constant 0 : index
      %91 = vector.load %arg11[%c0_53, %c0_54] : memref<16x32xf32, #tpu.memory_space<vmem>>, vector<16x32xf32>
      %92 = arith.mulf %84, %91 : vector<16x32xf32>
      %93 = arith.mulf %79, %85 : vector<16x32xf32>
      %94 = arith.addf %92, %93 : vector<16x32xf32>
      %95 = math.tanh %94 : vector<16x32xf32>
      %96 = arith.mulf %90, %95 : vector<16x32xf32>
      %97 = vector.broadcast %c0_i32_16 : i32 to vector<16x32xi32>
      %98 = arith.cmpi slt, %97, %11 : vector<16x32xi32>
      %c0_55 = arith.constant 0 : index
      %c0_56 = arith.constant 0 : index
      %99 = vector.load %arg10[%c0_55, %c0_56] : memref<16x32xf32, #tpu.memory_space<vmem>>, vector<16x32xf32>
      %100 = arith.select %98, %96, %99 : vector<16x32xi1>, vector<16x32xf32>
      %c0_57 = arith.constant 0 : index
      %c0_58 = arith.constant 0 : index
      %101 = vector.load %arg10[%c0_57, %c0_58] : memref<16x32xf32, #tpu.memory_space<vmem>>, vector<16x32xf32>
      tpu.vector_store %arg10[%c0_57, %c0_58], %100 {strides = array<i32>} : memref<16x32xf32, #tpu.memory_space<vmem>>, vector<16x32xf32>,
      %c0_59 = arith.constant 0 : index
      %c0_60 = arith.constant 0 : index
      %102 = vector.load %arg11[%c0_59, %c0_60] : memref<16x32xf32, #tpu.memory_space<vmem>>, vector<16x32xf32>
      %103 = arith.select %98, %94, %102 : vector<16x32xi1>, vector<16x32xf32>
      %c0_61 = arith.constant 0 : index
      %c0_62 = arith.constant 0 : index
      %104 = vector.load %arg11[%c0_61, %c0_62] : memref<16x32xf32, #tpu.memory_space<vmem>>, vector<16x32xf32>
      tpu.vector_store %arg11[%c0_61, %c0_62], %103 {strides = array<i32>} : memref<16x32xf32, #tpu.memory_space<vmem>>, vector<16x32xf32>,
    } else {
    }
    %c1_i32_18 = arith.constant 1 : i32
    %39 = arith.cmpi slt, %c1_i32_18, %1 : i32
    %40 = arith.extui %39 : i1 to i32
    %c0_i32_19 = arith.constant 0 : i32
    %41 = arith.cmpi ne, %40, %c0_i32_19 : i32
    scf.if %41 {
      %66 = arith.index_cast %c1_i32_18 : i32 to index
      %c0_40 = arith.constant 0 : index
      %c0_41 = arith.constant 0 : index
      %67 = vector.load %arg9[%66, %c0_40, %c0_41] : memref<8x16x128xf32, #tpu.memory_space<vmem>>, vector<1x16x128xf32>
      %68 = vector.shape_cast %67 : vector<1x16x128xf32> to vector<16x128xf32>
      %c0_42 = arith.constant 0 : index
      %c0_43 = arith.constant 0 : index
      %69 = vector.load %arg10[%c0_42, %c0_43] : memref<16x32xf32, #tpu.memory_space<vmem>>, vector<16x32xf32>
      %70 = arith.truncf %69 : vector<16x32xf32> to vector<16x32xbf16>
      %c0_44 = arith.constant 0 : index
      %c0_45 = arith.constant 0 : index
      %71 = vector.load %arg5[%c0_44, %c0_45] : memref<32x128xbf16, #tpu.memory_space<vmem>>, vector<32x128xbf16>
      %cst_46 = arith.constant dense<0.000000e+00> : vector<16x128xf32>
      %72 = tpu.matmul %70, %71, %cst_46 {dimension_numbers = #tpu.dot_dimension_numbers<[1], [0], [0], [1], [0, 0, 1, 1], [], []>} : vector<16x32xbf16>, vector<32x128xbf16>, vector<16x128xf32> -> vector<16x128xf32>
      %73 = arith.addf %68, %72 : vector<16x128xf32>
      %74 = math.tanh %73 : vector<16x128xf32>
      %75 = vector.extract_strided_slice %74 {offsets = [0, 0], sizes = [16, 32], strides = [1, 1]} : vector<16x128xf32> to vector<16x32xf32>
      %cst_47 = arith.constant 5.000000e-01 : f32
      %76 = vector.broadcast %cst_47 : f32 to vector<16x32xf32>
      %77 = arith.mulf %76, %75 : vector<16x32xf32>
      %cst_48 = arith.constant 5.000000e-01 : f32
      %78 = vector.broadcast %cst_48 : f32 to vector<16x32xf32>
      %79 = arith.addf %77, %78 : vector<16x32xf32>
      %80 = vector.extract_strided_slice %74 {offsets = [0, 32], sizes = [16, 32], strides = [1, 1]} : vector<16x128xf32> to vector<16x32xf32>
      %cst_49 = arith.constant 5.000000e-01 : f32
      %81 = vector.broadcast %cst_49 : f32 to vector<16x32xf32>
      %82 = arith.mulf %81, %80 : vector<16x32xf32>
      %cst_50 = arith.constant 5.000000e-01 : f32
      %83 = vector.broadcast %cst_50 : f32 to vector<16x32xf32>
      %84 = arith.addf %82, %83 : vector<16x32xf32>
      %85 = vector.extract_strided_slice %74 {offsets = [0, 64], sizes = [16, 32], strides = [1, 1]} : vector<16x128xf32> to vector<16x32xf32>
      %86 = vector.extract_strided_slice %74 {offsets = [0, 96], sizes = [16, 32], strides = [1, 1]} : vector<16x128xf32> to vector<16x32xf32>
      %cst_51 = arith.constant 5.000000e-01 : f32
      %87 = vector.broadcast %cst_51 : f32 to vector<16x32xf32>
      %88 = arith.mulf %87, %86 : vector<16x32xf32>
      %cst_52 = arith.constant 5.000000e-01 : f32
      %89 = vector.broadcast %cst_52 : f32 to vector<16x32xf32>
      %90 = arith.addf %88, %89 : vector<16x32xf32>
      %c0_53 = arith.constant 0 : index
      %c0_54 = arith.constant 0 : index
      %91 = vector.load %arg11[%c0_53, %c0_54] : memref<16x32xf32, #tpu.memory_space<vmem>>, vector<16x32xf32>
      %92 = arith.mulf %84, %91 : vector<16x32xf32>
      %93 = arith.mulf %79, %85 : vector<16x32xf32>
      %94 = arith.addf %92, %93 : vector<16x32xf32>
      %95 = math.tanh %94 : vector<16x32xf32>
      %96 = arith.mulf %90, %95 : vector<16x32xf32>
      %97 = vector.broadcast %c1_i32_18 : i32 to vector<16x32xi32>
      %98 = arith.cmpi slt, %97, %11 : vector<16x32xi32>
      %c0_55 = arith.constant 0 : index
      %c0_56 = arith.constant 0 : index
      %99 = vector.load %arg10[%c0_55, %c0_56] : memref<16x32xf32, #tpu.memory_space<vmem>>, vector<16x32xf32>
      %100 = arith.select %98, %96, %99 : vector<16x32xi1>, vector<16x32xf32>
      %c0_57 = arith.constant 0 : index
      %c0_58 = arith.constant 0 : index
      %101 = vector.load %arg10[%c0_57, %c0_58] : memref<16x32xf32, #tpu.memory_space<vmem>>, vector<16x32xf32>
      tpu.vector_store %arg10[%c0_57, %c0_58], %100 {strides = array<i32>} : memref<16x32xf32, #tpu.memory_space<vmem>>, vector<16x32xf32>,
      %c0_59 = arith.constant 0 : index
      %c0_60 = arith.constant 0 : index
      %102 = vector.load %arg11[%c0_59, %c0_60] : memref<16x32xf32, #tpu.memory_space<vmem>>, vector<16x32xf32>
      %103 = arith.select %98, %94, %102 : vector<16x32xi1>, vector<16x32xf32>
      %c0_61 = arith.constant 0 : index
      %c0_62 = arith.constant 0 : index
      %104 = vector.load %arg11[%c0_61, %c0_62] : memref<16x32xf32, #tpu.memory_space<vmem>>, vector<16x32xf32>
      tpu.vector_store %arg11[%c0_61, %c0_62], %103 {strides = array<i32>} : memref<16x32xf32, #tpu.memory_space<vmem>>, vector<16x32xf32>,
    } else {
    }
    %c2_i32_20 = arith.constant 2 : i32
    %42 = arith.cmpi slt, %c2_i32_20, %1 : i32
    %43 = arith.extui %42 : i1 to i32
    %c0_i32_21 = arith.constant 0 : i32
    %44 = arith.cmpi ne, %43, %c0_i32_21 : i32
    scf.if %44 {
      %66 = arith.index_cast %c2_i32_20 : i32 to index
      %c0_40 = arith.constant 0 : index
      %c0_41 = arith.constant 0 : index
      %67 = vector.load %arg9[%66, %c0_40, %c0_41] : memref<8x16x128xf32, #tpu.memory_space<vmem>>, vector<1x16x128xf32>
      %68 = vector.shape_cast %67 : vector<1x16x128xf32> to vector<16x128xf32>
      %c0_42 = arith.constant 0 : index
      %c0_43 = arith.constant 0 : index
      %69 = vector.load %arg10[%c0_42, %c0_43] : memref<16x32xf32, #tpu.memory_space<vmem>>, vector<16x32xf32>
      %70 = arith.truncf %69 : vector<16x32xf32> to vector<16x32xbf16>
      %c0_44 = arith.constant 0 : index
      %c0_45 = arith.constant 0 : index
      %71 = vector.load %arg5[%c0_44, %c0_45] : memref<32x128xbf16, #tpu.memory_space<vmem>>, vector<32x128xbf16>
      %cst_46 = arith.constant dense<0.000000e+00> : vector<16x128xf32>
      %72 = tpu.matmul %70, %71, %cst_46 {dimension_numbers = #tpu.dot_dimension_numbers<[1], [0], [0], [1], [0, 0, 1, 1], [], []>} : vector<16x32xbf16>, vector<32x128xbf16>, vector<16x128xf32> -> vector<16x128xf32>
      %73 = arith.addf %68, %72 : vector<16x128xf32>
      %74 = math.tanh %73 : vector<16x128xf32>
      %75 = vector.extract_strided_slice %74 {offsets = [0, 0], sizes = [16, 32], strides = [1, 1]} : vector<16x128xf32> to vector<16x32xf32>
      %cst_47 = arith.constant 5.000000e-01 : f32
      %76 = vector.broadcast %cst_47 : f32 to vector<16x32xf32>
      %77 = arith.mulf %76, %75 : vector<16x32xf32>
      %cst_48 = arith.constant 5.000000e-01 : f32
      %78 = vector.broadcast %cst_48 : f32 to vector<16x32xf32>
      %79 = arith.addf %77, %78 : vector<16x32xf32>
      %80 = vector.extract_strided_slice %74 {offsets = [0, 32], sizes = [16, 32], strides = [1, 1]} : vector<16x128xf32> to vector<16x32xf32>
      %cst_49 = arith.constant 5.000000e-01 : f32
      %81 = vector.broadcast %cst_49 : f32 to vector<16x32xf32>
      %82 = arith.mulf %81, %80 : vector<16x32xf32>
      %cst_50 = arith.constant 5.000000e-01 : f32
      %83 = vector.broadcast %cst_50 : f32 to vector<16x32xf32>
      %84 = arith.addf %82, %83 : vector<16x32xf32>
      %85 = vector.extract_strided_slice %74 {offsets = [0, 64], sizes = [16, 32], strides = [1, 1]} : vector<16x128xf32> to vector<16x32xf32>
      %86 = vector.extract_strided_slice %74 {offsets = [0, 96], sizes = [16, 32], strides = [1, 1]} : vector<16x128xf32> to vector<16x32xf32>
      %cst_51 = arith.constant 5.000000e-01 : f32
      %87 = vector.broadcast %cst_51 : f32 to vector<16x32xf32>
      %88 = arith.mulf %87, %86 : vector<16x32xf32>
      %cst_52 = arith.constant 5.000000e-01 : f32
      %89 = vector.broadcast %cst_52 : f32 to vector<16x32xf32>
      %90 = arith.addf %88, %89 : vector<16x32xf32>
      %c0_53 = arith.constant 0 : index
      %c0_54 = arith.constant 0 : index
      %91 = vector.load %arg11[%c0_53, %c0_54] : memref<16x32xf32, #tpu.memory_space<vmem>>, vector<16x32xf32>
      %92 = arith.mulf %84, %91 : vector<16x32xf32>
      %93 = arith.mulf %79, %85 : vector<16x32xf32>
      %94 = arith.addf %92, %93 : vector<16x32xf32>
      %95 = math.tanh %94 : vector<16x32xf32>
      %96 = arith.mulf %90, %95 : vector<16x32xf32>
      %97 = vector.broadcast %c2_i32_20 : i32 to vector<16x32xi32>
      %98 = arith.cmpi slt, %97, %11 : vector<16x32xi32>
      %c0_55 = arith.constant 0 : index
      %c0_56 = arith.constant 0 : index
      %99 = vector.load %arg10[%c0_55, %c0_56] : memref<16x32xf32, #tpu.memory_space<vmem>>, vector<16x32xf32>
      %100 = arith.select %98, %96, %99 : vector<16x32xi1>, vector<16x32xf32>
      %c0_57 = arith.constant 0 : index
      %c0_58 = arith.constant 0 : index
      %101 = vector.load %arg10[%c0_57, %c0_58] : memref<16x32xf32, #tpu.memory_space<vmem>>, vector<16x32xf32>
      tpu.vector_store %arg10[%c0_57, %c0_58], %100 {strides = array<i32>} : memref<16x32xf32, #tpu.memory_space<vmem>>, vector<16x32xf32>,
      %c0_59 = arith.constant 0 : index
      %c0_60 = arith.constant 0 : index
      %102 = vector.load %arg11[%c0_59, %c0_60] : memref<16x32xf32, #tpu.memory_space<vmem>>, vector<16x32xf32>
      %103 = arith.select %98, %94, %102 : vector<16x32xi1>, vector<16x32xf32>
      %c0_61 = arith.constant 0 : index
      %c0_62 = arith.constant 0 : index
      %104 = vector.load %arg11[%c0_61, %c0_62] : memref<16x32xf32, #tpu.memory_space<vmem>>, vector<16x32xf32>
      tpu.vector_store %arg11[%c0_61, %c0_62], %103 {strides = array<i32>} : memref<16x32xf32, #tpu.memory_space<vmem>>, vector<16x32xf32>,
    } else {
    }
    %c3_i32_22 = arith.constant 3 : i32
    %45 = arith.cmpi slt, %c3_i32_22, %1 : i32
    %46 = arith.extui %45 : i1 to i32
    %c0_i32_23 = arith.constant 0 : i32
    %47 = arith.cmpi ne, %46, %c0_i32_23 : i32
    scf.if %47 {
      %66 = arith.index_cast %c3_i32_22 : i32 to index
      %c0_40 = arith.constant 0 : index
      %c0_41 = arith.constant 0 : index
      %67 = vector.load %arg9[%66, %c0_40, %c0_41] : memref<8x16x128xf32, #tpu.memory_space<vmem>>, vector<1x16x128xf32>
      %68 = vector.shape_cast %67 : vector<1x16x128xf32> to vector<16x128xf32>
      %c0_42 = arith.constant 0 : index
      %c0_43 = arith.constant 0 : index
      %69 = vector.load %arg10[%c0_42, %c0_43] : memref<16x32xf32, #tpu.memory_space<vmem>>, vector<16x32xf32>
      %70 = arith.truncf %69 : vector<16x32xf32> to vector<16x32xbf16>
      %c0_44 = arith.constant 0 : index
      %c0_45 = arith.constant 0 : index
      %71 = vector.load %arg5[%c0_44, %c0_45] : memref<32x128xbf16, #tpu.memory_space<vmem>>, vector<32x128xbf16>
      %cst_46 = arith.constant dense<0.000000e+00> : vector<16x128xf32>
      %72 = tpu.matmul %70, %71, %cst_46 {dimension_numbers = #tpu.dot_dimension_numbers<[1], [0], [0], [1], [0, 0, 1, 1], [], []>} : vector<16x32xbf16>, vector<32x128xbf16>, vector<16x128xf32> -> vector<16x128xf32>
      %73 = arith.addf %68, %72 : vector<16x128xf32>
      %74 = math.tanh %73 : vector<16x128xf32>
      %75 = vector.extract_strided_slice %74 {offsets = [0, 0], sizes = [16, 32], strides = [1, 1]} : vector<16x128xf32> to vector<16x32xf32>
      %cst_47 = arith.constant 5.000000e-01 : f32
      %76 = vector.broadcast %cst_47 : f32 to vector<16x32xf32>
      %77 = arith.mulf %76, %75 : vector<16x32xf32>
      %cst_48 = arith.constant 5.000000e-01 : f32
      %78 = vector.broadcast %cst_48 : f32 to vector<16x32xf32>
      %79 = arith.addf %77, %78 : vector<16x32xf32>
      %80 = vector.extract_strided_slice %74 {offsets = [0, 32], sizes = [16, 32], strides = [1, 1]} : vector<16x128xf32> to vector<16x32xf32>
      %cst_49 = arith.constant 5.000000e-01 : f32
      %81 = vector.broadcast %cst_49 : f32 to vector<16x32xf32>
      %82 = arith.mulf %81, %80 : vector<16x32xf32>
      %cst_50 = arith.constant 5.000000e-01 : f32
      %83 = vector.broadcast %cst_50 : f32 to vector<16x32xf32>
      %84 = arith.addf %82, %83 : vector<16x32xf32>
      %85 = vector.extract_strided_slice %74 {offsets = [0, 64], sizes = [16, 32], strides = [1, 1]} : vector<16x128xf32> to vector<16x32xf32>
      %86 = vector.extract_strided_slice %74 {offsets = [0, 96], sizes = [16, 32], strides = [1, 1]} : vector<16x128xf32> to vector<16x32xf32>
      %cst_51 = arith.constant 5.000000e-01 : f32
      %87 = vector.broadcast %cst_51 : f32 to vector<16x32xf32>
      %88 = arith.mulf %87, %86 : vector<16x32xf32>
      %cst_52 = arith.constant 5.000000e-01 : f32
      %89 = vector.broadcast %cst_52 : f32 to vector<16x32xf32>
      %90 = arith.addf %88, %89 : vector<16x32xf32>
      %c0_53 = arith.constant 0 : index
      %c0_54 = arith.constant 0 : index
      %91 = vector.load %arg11[%c0_53, %c0_54] : memref<16x32xf32, #tpu.memory_space<vmem>>, vector<16x32xf32>
      %92 = arith.mulf %84, %91 : vector<16x32xf32>
      %93 = arith.mulf %79, %85 : vector<16x32xf32>
      %94 = arith.addf %92, %93 : vector<16x32xf32>
      %95 = math.tanh %94 : vector<16x32xf32>
      %96 = arith.mulf %90, %95 : vector<16x32xf32>
      %97 = vector.broadcast %c3_i32_22 : i32 to vector<16x32xi32>
      %98 = arith.cmpi slt, %97, %11 : vector<16x32xi32>
      %c0_55 = arith.constant 0 : index
      %c0_56 = arith.constant 0 : index
      %99 = vector.load %arg10[%c0_55, %c0_56] : memref<16x32xf32, #tpu.memory_space<vmem>>, vector<16x32xf32>
      %100 = arith.select %98, %96, %99 : vector<16x32xi1>, vector<16x32xf32>
      %c0_57 = arith.constant 0 : index
      %c0_58 = arith.constant 0 : index
      %101 = vector.load %arg10[%c0_57, %c0_58] : memref<16x32xf32, #tpu.memory_space<vmem>>, vector<16x32xf32>
      tpu.vector_store %arg10[%c0_57, %c0_58], %100 {strides = array<i32>} : memref<16x32xf32, #tpu.memory_space<vmem>>, vector<16x32xf32>,
      %c0_59 = arith.constant 0 : index
      %c0_60 = arith.constant 0 : index
      %102 = vector.load %arg11[%c0_59, %c0_60] : memref<16x32xf32, #tpu.memory_space<vmem>>, vector<16x32xf32>
      %103 = arith.select %98, %94, %102 : vector<16x32xi1>, vector<16x32xf32>
      %c0_61 = arith.constant 0 : index
      %c0_62 = arith.constant 0 : index
      %104 = vector.load %arg11[%c0_61, %c0_62] : memref<16x32xf32, #tpu.memory_space<vmem>>, vector<16x32xf32>
      tpu.vector_store %arg11[%c0_61, %c0_62], %103 {strides = array<i32>} : memref<16x32xf32, #tpu.memory_space<vmem>>, vector<16x32xf32>,
    } else {
    }
    %c4_i32_24 = arith.constant 4 : i32
    %48 = arith.cmpi slt, %c4_i32_24, %1 : i32
    %49 = arith.extui %48 : i1 to i32
    %c0_i32_25 = arith.constant 0 : i32
    %50 = arith.cmpi ne, %49, %c0_i32_25 : i32
    scf.if %50 {
      %66 = arith.index_cast %c4_i32_24 : i32 to index
      %c0_40 = arith.constant 0 : index
      %c0_41 = arith.constant 0 : index
      %67 = vector.load %arg9[%66, %c0_40, %c0_41] : memref<8x16x128xf32, #tpu.memory_space<vmem>>, vector<1x16x128xf32>
      %68 = vector.shape_cast %67 : vector<1x16x128xf32> to vector<16x128xf32>
      %c0_42 = arith.constant 0 : index
      %c0_43 = arith.constant 0 : index
      %69 = vector.load %arg10[%c0_42, %c0_43] : memref<16x32xf32, #tpu.memory_space<vmem>>, vector<16x32xf32>
      %70 = arith.truncf %69 : vector<16x32xf32> to vector<16x32xbf16>
      %c0_44 = arith.constant 0 : index
      %c0_45 = arith.constant 0 : index
      %71 = vector.load %arg5[%c0_44, %c0_45] : memref<32x128xbf16, #tpu.memory_space<vmem>>, vector<32x128xbf16>
      %cst_46 = arith.constant dense<0.000000e+00> : vector<16x128xf32>
      %72 = tpu.matmul %70, %71, %cst_46 {dimension_numbers = #tpu.dot_dimension_numbers<[1], [0], [0], [1], [0, 0, 1, 1], [], []>} : vector<16x32xbf16>, vector<32x128xbf16>, vector<16x128xf32> -> vector<16x128xf32>
      %73 = arith.addf %68, %72 : vector<16x128xf32>
      %74 = math.tanh %73 : vector<16x128xf32>
      %75 = vector.extract_strided_slice %74 {offsets = [0, 0], sizes = [16, 32], strides = [1, 1]} : vector<16x128xf32> to vector<16x32xf32>
      %cst_47 = arith.constant 5.000000e-01 : f32
      %76 = vector.broadcast %cst_47 : f32 to vector<16x32xf32>
      %77 = arith.mulf %76, %75 : vector<16x32xf32>
      %cst_48 = arith.constant 5.000000e-01 : f32
      %78 = vector.broadcast %cst_48 : f32 to vector<16x32xf32>
      %79 = arith.addf %77, %78 : vector<16x32xf32>
      %80 = vector.extract_strided_slice %74 {offsets = [0, 32], sizes = [16, 32], strides = [1, 1]} : vector<16x128xf32> to vector<16x32xf32>
      %cst_49 = arith.constant 5.000000e-01 : f32
      %81 = vector.broadcast %cst_49 : f32 to vector<16x32xf32>
      %82 = arith.mulf %81, %80 : vector<16x32xf32>
      %cst_50 = arith.constant 5.000000e-01 : f32
      %83 = vector.broadcast %cst_50 : f32 to vector<16x32xf32>
      %84 = arith.addf %82, %83 : vector<16x32xf32>
      %85 = vector.extract_strided_slice %74 {offsets = [0, 64], sizes = [16, 32], strides = [1, 1]} : vector<16x128xf32> to vector<16x32xf32>
      %86 = vector.extract_strided_slice %74 {offsets = [0, 96], sizes = [16, 32], strides = [1, 1]} : vector<16x128xf32> to vector<16x32xf32>
      %cst_51 = arith.constant 5.000000e-01 : f32
      %87 = vector.broadcast %cst_51 : f32 to vector<16x32xf32>
      %88 = arith.mulf %87, %86 : vector<16x32xf32>
      %cst_52 = arith.constant 5.000000e-01 : f32
      %89 = vector.broadcast %cst_52 : f32 to vector<16x32xf32>
      %90 = arith.addf %88, %89 : vector<16x32xf32>
      %c0_53 = arith.constant 0 : index
      %c0_54 = arith.constant 0 : index
      %91 = vector.load %arg11[%c0_53, %c0_54] : memref<16x32xf32, #tpu.memory_space<vmem>>, vector<16x32xf32>
      %92 = arith.mulf %84, %91 : vector<16x32xf32>
      %93 = arith.mulf %79, %85 : vector<16x32xf32>
      %94 = arith.addf %92, %93 : vector<16x32xf32>
      %95 = math.tanh %94 : vector<16x32xf32>
      %96 = arith.mulf %90, %95 : vector<16x32xf32>
      %97 = vector.broadcast %c4_i32_24 : i32 to vector<16x32xi32>
      %98 = arith.cmpi slt, %97, %11 : vector<16x32xi32>
      %c0_55 = arith.constant 0 : index
      %c0_56 = arith.constant 0 : index
      %99 = vector.load %arg10[%c0_55, %c0_56] : memref<16x32xf32, #tpu.memory_space<vmem>>, vector<16x32xf32>
      %100 = arith.select %98, %96, %99 : vector<16x32xi1>, vector<16x32xf32>
      %c0_57 = arith.constant 0 : index
      %c0_58 = arith.constant 0 : index
      %101 = vector.load %arg10[%c0_57, %c0_58] : memref<16x32xf32, #tpu.memory_space<vmem>>, vector<16x32xf32>
      tpu.vector_store %arg10[%c0_57, %c0_58], %100 {strides = array<i32>} : memref<16x32xf32, #tpu.memory_space<vmem>>, vector<16x32xf32>,
      %c0_59 = arith.constant 0 : index
      %c0_60 = arith.constant 0 : index
      %102 = vector.load %arg11[%c0_59, %c0_60] : memref<16x32xf32, #tpu.memory_space<vmem>>, vector<16x32xf32>
      %103 = arith.select %98, %94, %102 : vector<16x32xi1>, vector<16x32xf32>
      %c0_61 = arith.constant 0 : index
      %c0_62 = arith.constant 0 : index
      %104 = vector.load %arg11[%c0_61, %c0_62] : memref<16x32xf32, #tpu.memory_space<vmem>>, vector<16x32xf32>
      tpu.vector_store %arg11[%c0_61, %c0_62], %103 {strides = array<i32>} : memref<16x32xf32, #tpu.memory_space<vmem>>, vector<16x32xf32>,
    } else {
    }
    %c5_i32_26 = arith.constant 5 : i32
    %51 = arith.cmpi slt, %c5_i32_26, %1 : i32
    %52 = arith.extui %51 : i1 to i32
    %c0_i32_27 = arith.constant 0 : i32
    %53 = arith.cmpi ne, %52, %c0_i32_27 : i32
    scf.if %53 {
      %66 = arith.index_cast %c5_i32_26 : i32 to index
      %c0_40 = arith.constant 0 : index
      %c0_41 = arith.constant 0 : index
      %67 = vector.load %arg9[%66, %c0_40, %c0_41] : memref<8x16x128xf32, #tpu.memory_space<vmem>>, vector<1x16x128xf32>
      %68 = vector.shape_cast %67 : vector<1x16x128xf32> to vector<16x128xf32>
      %c0_42 = arith.constant 0 : index
      %c0_43 = arith.constant 0 : index
      %69 = vector.load %arg10[%c0_42, %c0_43] : memref<16x32xf32, #tpu.memory_space<vmem>>, vector<16x32xf32>
      %70 = arith.truncf %69 : vector<16x32xf32> to vector<16x32xbf16>
      %c0_44 = arith.constant 0 : index
      %c0_45 = arith.constant 0 : index
      %71 = vector.load %arg5[%c0_44, %c0_45] : memref<32x128xbf16, #tpu.memory_space<vmem>>, vector<32x128xbf16>
      %cst_46 = arith.constant dense<0.000000e+00> : vector<16x128xf32>
      %72 = tpu.matmul %70, %71, %cst_46 {dimension_numbers = #tpu.dot_dimension_numbers<[1], [0], [0], [1], [0, 0, 1, 1], [], []>} : vector<16x32xbf16>, vector<32x128xbf16>, vector<16x128xf32> -> vector<16x128xf32>
      %73 = arith.addf %68, %72 : vector<16x128xf32>
      %74 = math.tanh %73 : vector<16x128xf32>
      %75 = vector.extract_strided_slice %74 {offsets = [0, 0], sizes = [16, 32], strides = [1, 1]} : vector<16x128xf32> to vector<16x32xf32>
      %cst_47 = arith.constant 5.000000e-01 : f32
      %76 = vector.broadcast %cst_47 : f32 to vector<16x32xf32>
      %77 = arith.mulf %76, %75 : vector<16x32xf32>
      %cst_48 = arith.constant 5.000000e-01 : f32
      %78 = vector.broadcast %cst_48 : f32 to vector<16x32xf32>
      %79 = arith.addf %77, %78 : vector<16x32xf32>
      %80 = vector.extract_strided_slice %74 {offsets = [0, 32], sizes = [16, 32], strides = [1, 1]} : vector<16x128xf32> to vector<16x32xf32>
      %cst_49 = arith.constant 5.000000e-01 : f32
      %81 = vector.broadcast %cst_49 : f32 to vector<16x32xf32>
      %82 = arith.mulf %81, %80 : vector<16x32xf32>
      %cst_50 = arith.constant 5.000000e-01 : f32
      %83 = vector.broadcast %cst_50 : f32 to vector<16x32xf32>
      %84 = arith.addf %82, %83 : vector<16x32xf32>
      %85 = vector.extract_strided_slice %74 {offsets = [0, 64], sizes = [16, 32], strides = [1, 1]} : vector<16x128xf32> to vector<16x32xf32>
      %86 = vector.extract_strided_slice %74 {offsets = [0, 96], sizes = [16, 32], strides = [1, 1]} : vector<16x128xf32> to vector<16x32xf32>
      %cst_51 = arith.constant 5.000000e-01 : f32
      %87 = vector.broadcast %cst_51 : f32 to vector<16x32xf32>
      %88 = arith.mulf %87, %86 : vector<16x32xf32>
      %cst_52 = arith.constant 5.000000e-01 : f32
      %89 = vector.broadcast %cst_52 : f32 to vector<16x32xf32>
      %90 = arith.addf %88, %89 : vector<16x32xf32>
      %c0_53 = arith.constant 0 : index
      %c0_54 = arith.constant 0 : index
      %91 = vector.load %arg11[%c0_53, %c0_54] : memref<16x32xf32, #tpu.memory_space<vmem>>, vector<16x32xf32>
      %92 = arith.mulf %84, %91 : vector<16x32xf32>
      %93 = arith.mulf %79, %85 : vector<16x32xf32>
      %94 = arith.addf %92, %93 : vector<16x32xf32>
      %95 = math.tanh %94 : vector<16x32xf32>
      %96 = arith.mulf %90, %95 : vector<16x32xf32>
      %97 = vector.broadcast %c5_i32_26 : i32 to vector<16x32xi32>
      %98 = arith.cmpi slt, %97, %11 : vector<16x32xi32>
      %c0_55 = arith.constant 0 : index
      %c0_56 = arith.constant 0 : index
      %99 = vector.load %arg10[%c0_55, %c0_56] : memref<16x32xf32, #tpu.memory_space<vmem>>, vector<16x32xf32>
      %100 = arith.select %98, %96, %99 : vector<16x32xi1>, vector<16x32xf32>
      %c0_57 = arith.constant 0 : index
      %c0_58 = arith.constant 0 : index
      %101 = vector.load %arg10[%c0_57, %c0_58] : memref<16x32xf32, #tpu.memory_space<vmem>>, vector<16x32xf32>
      tpu.vector_store %arg10[%c0_57, %c0_58], %100 {strides = array<i32>} : memref<16x32xf32, #tpu.memory_space<vmem>>, vector<16x32xf32>,
      %c0_59 = arith.constant 0 : index
      %c0_60 = arith.constant 0 : index
      %102 = vector.load %arg11[%c0_59, %c0_60] : memref<16x32xf32, #tpu.memory_space<vmem>>, vector<16x32xf32>
      %103 = arith.select %98, %94, %102 : vector<16x32xi1>, vector<16x32xf32>
      %c0_61 = arith.constant 0 : index
      %c0_62 = arith.constant 0 : index
      %104 = vector.load %arg11[%c0_61, %c0_62] : memref<16x32xf32, #tpu.memory_space<vmem>>, vector<16x32xf32>
      tpu.vector_store %arg11[%c0_61, %c0_62], %103 {strides = array<i32>} : memref<16x32xf32, #tpu.memory_space<vmem>>, vector<16x32xf32>,
    } else {
    }
    %c6_i32_28 = arith.constant 6 : i32
    %54 = arith.cmpi slt, %c6_i32_28, %1 : i32
    %55 = arith.extui %54 : i1 to i32
    %c0_i32_29 = arith.constant 0 : i32
    %56 = arith.cmpi ne, %55, %c0_i32_29 : i32
    scf.if %56 {
      %66 = arith.index_cast %c6_i32_28 : i32 to index
      %c0_40 = arith.constant 0 : index
      %c0_41 = arith.constant 0 : index
      %67 = vector.load %arg9[%66, %c0_40, %c0_41] : memref<8x16x128xf32, #tpu.memory_space<vmem>>, vector<1x16x128xf32>
      %68 = vector.shape_cast %67 : vector<1x16x128xf32> to vector<16x128xf32>
      %c0_42 = arith.constant 0 : index
      %c0_43 = arith.constant 0 : index
      %69 = vector.load %arg10[%c0_42, %c0_43] : memref<16x32xf32, #tpu.memory_space<vmem>>, vector<16x32xf32>
      %70 = arith.truncf %69 : vector<16x32xf32> to vector<16x32xbf16>
      %c0_44 = arith.constant 0 : index
      %c0_45 = arith.constant 0 : index
      %71 = vector.load %arg5[%c0_44, %c0_45] : memref<32x128xbf16, #tpu.memory_space<vmem>>, vector<32x128xbf16>
      %cst_46 = arith.constant dense<0.000000e+00> : vector<16x128xf32>
      %72 = tpu.matmul %70, %71, %cst_46 {dimension_numbers = #tpu.dot_dimension_numbers<[1], [0], [0], [1], [0, 0, 1, 1], [], []>} : vector<16x32xbf16>, vector<32x128xbf16>, vector<16x128xf32> -> vector<16x128xf32>
      %73 = arith.addf %68, %72 : vector<16x128xf32>
      %74 = math.tanh %73 : vector<16x128xf32>
      %75 = vector.extract_strided_slice %74 {offsets = [0, 0], sizes = [16, 32], strides = [1, 1]} : vector<16x128xf32> to vector<16x32xf32>
      %cst_47 = arith.constant 5.000000e-01 : f32
      %76 = vector.broadcast %cst_47 : f32 to vector<16x32xf32>
      %77 = arith.mulf %76, %75 : vector<16x32xf32>
      %cst_48 = arith.constant 5.000000e-01 : f32
      %78 = vector.broadcast %cst_48 : f32 to vector<16x32xf32>
      %79 = arith.addf %77, %78 : vector<16x32xf32>
      %80 = vector.extract_strided_slice %74 {offsets = [0, 32], sizes = [16, 32], strides = [1, 1]} : vector<16x128xf32> to vector<16x32xf32>
      %cst_49 = arith.constant 5.000000e-01 : f32
      %81 = vector.broadcast %cst_49 : f32 to vector<16x32xf32>
      %82 = arith.mulf %81, %80 : vector<16x32xf32>
      %cst_50 = arith.constant 5.000000e-01 : f32
      %83 = vector.broadcast %cst_50 : f32 to vector<16x32xf32>
      %84 = arith.addf %82, %83 : vector<16x32xf32>
      %85 = vector.extract_strided_slice %74 {offsets = [0, 64], sizes = [16, 32], strides = [1, 1]} : vector<16x128xf32> to vector<16x32xf32>
      %86 = vector.extract_strided_slice %74 {offsets = [0, 96], sizes = [16, 32], strides = [1, 1]} : vector<16x128xf32> to vector<16x32xf32>
      %cst_51 = arith.constant 5.000000e-01 : f32
      %87 = vector.broadcast %cst_51 : f32 to vector<16x32xf32>
      %88 = arith.mulf %87, %86 : vector<16x32xf32>
      %cst_52 = arith.constant 5.000000e-01 : f32
      %89 = vector.broadcast %cst_52 : f32 to vector<16x32xf32>
      %90 = arith.addf %88, %89 : vector<16x32xf32>
      %c0_53 = arith.constant 0 : index
      %c0_54 = arith.constant 0 : index
      %91 = vector.load %arg11[%c0_53, %c0_54] : memref<16x32xf32, #tpu.memory_space<vmem>>, vector<16x32xf32>
      %92 = arith.mulf %84, %91 : vector<16x32xf32>
      %93 = arith.mulf %79, %85 : vector<16x32xf32>
      %94 = arith.addf %92, %93 : vector<16x32xf32>
      %95 = math.tanh %94 : vector<16x32xf32>
      %96 = arith.mulf %90, %95 : vector<16x32xf32>
      %97 = vector.broadcast %c6_i32_28 : i32 to vector<16x32xi32>
      %98 = arith.cmpi slt, %97, %11 : vector<16x32xi32>
      %c0_55 = arith.constant 0 : index
      %c0_56 = arith.constant 0 : index
      %99 = vector.load %arg10[%c0_55, %c0_56] : memref<16x32xf32, #tpu.memory_space<vmem>>, vector<16x32xf32>
      %100 = arith.select %98, %96, %99 : vector<16x32xi1>, vector<16x32xf32>
      %c0_57 = arith.constant 0 : index
      %c0_58 = arith.constant 0 : index
      %101 = vector.load %arg10[%c0_57, %c0_58] : memref<16x32xf32, #tpu.memory_space<vmem>>, vector<16x32xf32>
      tpu.vector_store %arg10[%c0_57, %c0_58], %100 {strides = array<i32>} : memref<16x32xf32, #tpu.memory_space<vmem>>, vector<16x32xf32>,
      %c0_59 = arith.constant 0 : index
      %c0_60 = arith.constant 0 : index
      %102 = vector.load %arg11[%c0_59, %c0_60] : memref<16x32xf32, #tpu.memory_space<vmem>>, vector<16x32xf32>
      %103 = arith.select %98, %94, %102 : vector<16x32xi1>, vector<16x32xf32>
      %c0_61 = arith.constant 0 : index
      %c0_62 = arith.constant 0 : index
      %104 = vector.load %arg11[%c0_61, %c0_62] : memref<16x32xf32, #tpu.memory_space<vmem>>, vector<16x32xf32>
      tpu.vector_store %arg11[%c0_61, %c0_62], %103 {strides = array<i32>} : memref<16x32xf32, #tpu.memory_space<vmem>>, vector<16x32xf32>,
    } else {
    }
    %c7_i32_30 = arith.constant 7 : i32
    %57 = arith.cmpi slt, %c7_i32_30, %1 : i32
    %58 = arith.extui %57 : i1 to i32
    %c0_i32_31 = arith.constant 0 : i32
    %59 = arith.cmpi ne, %58, %c0_i32_31 : i32
    scf.if %59 {
      %66 = arith.index_cast %c7_i32_30 : i32 to index
      %c0_40 = arith.constant 0 : index
      %c0_41 = arith.constant 0 : index
      %67 = vector.load %arg9[%66, %c0_40, %c0_41] : memref<8x16x128xf32, #tpu.memory_space<vmem>>, vector<1x16x128xf32>
      %68 = vector.shape_cast %67 : vector<1x16x128xf32> to vector<16x128xf32>
      %c0_42 = arith.constant 0 : index
      %c0_43 = arith.constant 0 : index
      %69 = vector.load %arg10[%c0_42, %c0_43] : memref<16x32xf32, #tpu.memory_space<vmem>>, vector<16x32xf32>
      %70 = arith.truncf %69 : vector<16x32xf32> to vector<16x32xbf16>
      %c0_44 = arith.constant 0 : index
      %c0_45 = arith.constant 0 : index
      %71 = vector.load %arg5[%c0_44, %c0_45] : memref<32x128xbf16, #tpu.memory_space<vmem>>, vector<32x128xbf16>
      %cst_46 = arith.constant dense<0.000000e+00> : vector<16x128xf32>
      %72 = tpu.matmul %70, %71, %cst_46 {dimension_numbers = #tpu.dot_dimension_numbers<[1], [0], [0], [1], [0, 0, 1, 1], [], []>} : vector<16x32xbf16>, vector<32x128xbf16>, vector<16x128xf32> -> vector<16x128xf32>
      %73 = arith.addf %68, %72 : vector<16x128xf32>
      %74 = math.tanh %73 : vector<16x128xf32>
      %75 = vector.extract_strided_slice %74 {offsets = [0, 0], sizes = [16, 32], strides = [1, 1]} : vector<16x128xf32> to vector<16x32xf32>
      %cst_47 = arith.constant 5.000000e-01 : f32
      %76 = vector.broadcast %cst_47 : f32 to vector<16x32xf32>
      %77 = arith.mulf %76, %75 : vector<16x32xf32>
      %cst_48 = arith.constant 5.000000e-01 : f32
      %78 = vector.broadcast %cst_48 : f32 to vector<16x32xf32>
      %79 = arith.addf %77, %78 : vector<16x32xf32>
      %80 = vector.extract_strided_slice %74 {offsets = [0, 32], sizes = [16, 32], strides = [1, 1]} : vector<16x128xf32> to vector<16x32xf32>
      %cst_49 = arith.constant 5.000000e-01 : f32
      %81 = vector.broadcast %cst_49 : f32 to vector<16x32xf32>
      %82 = arith.mulf %81, %80 : vector<16x32xf32>
      %cst_50 = arith.constant 5.000000e-01 : f32
      %83 = vector.broadcast %cst_50 : f32 to vector<16x32xf32>
      %84 = arith.addf %82, %83 : vector<16x32xf32>
      %85 = vector.extract_strided_slice %74 {offsets = [0, 64], sizes = [16, 32], strides = [1, 1]} : vector<16x128xf32> to vector<16x32xf32>
      %86 = vector.extract_strided_slice %74 {offsets = [0, 96], sizes = [16, 32], strides = [1, 1]} : vector<16x128xf32> to vector<16x32xf32>
      %cst_51 = arith.constant 5.000000e-01 : f32
      %87 = vector.broadcast %cst_51 : f32 to vector<16x32xf32>
      %88 = arith.mulf %87, %86 : vector<16x32xf32>
      %cst_52 = arith.constant 5.000000e-01 : f32
      %89 = vector.broadcast %cst_52 : f32 to vector<16x32xf32>
      %90 = arith.addf %88, %89 : vector<16x32xf32>
      %c0_53 = arith.constant 0 : index
      %c0_54 = arith.constant 0 : index
      %91 = vector.load %arg11[%c0_53, %c0_54] : memref<16x32xf32, #tpu.memory_space<vmem>>, vector<16x32xf32>
      %92 = arith.mulf %84, %91 : vector<16x32xf32>
      %93 = arith.mulf %79, %85 : vector<16x32xf32>
      %94 = arith.addf %92, %93 : vector<16x32xf32>
      %95 = math.tanh %94 : vector<16x32xf32>
      %96 = arith.mulf %90, %95 : vector<16x32xf32>
      %97 = vector.broadcast %c7_i32_30 : i32 to vector<16x32xi32>
      %98 = arith.cmpi slt, %97, %11 : vector<16x32xi32>
      %c0_55 = arith.constant 0 : index
      %c0_56 = arith.constant 0 : index
      %99 = vector.load %arg10[%c0_55, %c0_56] : memref<16x32xf32, #tpu.memory_space<vmem>>, vector<16x32xf32>
      %100 = arith.select %98, %96, %99 : vector<16x32xi1>, vector<16x32xf32>
      %c0_57 = arith.constant 0 : index
      %c0_58 = arith.constant 0 : index
      %101 = vector.load %arg10[%c0_57, %c0_58] : memref<16x32xf32, #tpu.memory_space<vmem>>, vector<16x32xf32>
      tpu.vector_store %arg10[%c0_57, %c0_58], %100 {strides = array<i32>} : memref<16x32xf32, #tpu.memory_space<vmem>>, vector<16x32xf32>,
      %c0_59 = arith.constant 0 : index
      %c0_60 = arith.constant 0 : index
      %102 = vector.load %arg11[%c0_59, %c0_60] : memref<16x32xf32, #tpu.memory_space<vmem>>, vector<16x32xf32>
      %103 = arith.select %98, %94, %102 : vector<16x32xi1>, vector<16x32xf32>
      %c0_61 = arith.constant 0 : index
      %c0_62 = arith.constant 0 : index
      %104 = vector.load %arg11[%c0_61, %c0_62] : memref<16x32xf32, #tpu.memory_space<vmem>>, vector<16x32xf32>
      tpu.vector_store %arg11[%c0_61, %c0_62], %103 {strides = array<i32>} : memref<16x32xf32, #tpu.memory_space<vmem>>, vector<16x32xf32>,
    } else {
    }
    %c8_i32_32 = arith.constant 8 : i32
    %c0_33 = arith.constant 0 : index
    %c0_34 = arith.constant 0 : index
    %60 = vector.load %arg10[%c0_33, %c0_34] : memref<16x32xf32, #tpu.memory_space<vmem>>, vector<16x32xf32>
    %c0_35 = arith.constant 0 : index
    %c0_36 = arith.constant 0 : index
    %61 = vector.load %arg7[%c0_35, %c0_36] : memref<16x32xf32, #tpu.memory_space<vmem>>, vector<16x32xf32>
    %62 = arith.mulf %60, %61 : vector<16x32xf32>
    %cst_37 = arith.constant dense<0.000000e+00> : vector<16xf32>
    %63 = vector.multi_reduction <add>, %62, %cst_37 [1] : vector<16x32xf32> to vector<16xf32>
    %64 = vector.shape_cast %63 : vector<16xf32> to vector<16x1xf32>
    %c0_38 = arith.constant 0 : index
    %c0_39 = arith.constant 0 : index
    %65 = vector.load %arg8[%c0_38, %c0_39] : memref<16x1xf32, #tpu.memory_space<vmem>>, vector<16x1xf32>
    tpu.vector_store %arg8[%c0_38, %c0_39], %64 {strides = array<i32>} : memref<16x1xf32, #tpu.memory_space<vmem>>, vector<16x1xf32>,
    return
  }
  func.func @transform_0(%arg0: i32, %arg1: memref<1xi32, #tpu.memory_space<smem>>) -> (i32, i32, i32) {
    %c0_i32 = arith.constant 0 : i32
    %c0_i32_0 = arith.constant 0 : i32
    %c0_i32_1 = arith.constant 0 : i32
    return %c0_i32, %arg0, %c0_i32_0 : i32, i32, i32
  }
  func.func @transform_1(%arg0: i32, %arg1: memref<1xi32, #tpu.memory_space<smem>>) -> (i32, i32) {
    %c0_i32 = arith.constant 0 : i32
    %c0_i32_0 = arith.constant 0 : i32
    return %arg0, %c0_i32 : i32, i32
  }
  func.func @transform_2(%arg0: i32, %arg1: memref<1xi32, #tpu.memory_space<smem>>) -> (i32, i32) {
    %c0_i32 = arith.constant 0 : i32
    %c0_i32_0 = arith.constant 0 : i32
    %c0_i32_1 = arith.constant 0 : i32
    return %c0_i32, %c0_i32_0 : i32, i32
  }
  func.func @transform_3(%arg0: i32, %arg1: memref<1xi32, #tpu.memory_space<smem>>) -> (i32, i32) {
    %c0_i32 = arith.constant 0 : i32
    %c0_i32_0 = arith.constant 0 : i32
    %c0_i32_1 = arith.constant 0 : i32
    return %c0_i32, %c0_i32_0 : i32, i32
  }
  func.func @transform_4(%arg0: i32, %arg1: memref<1xi32, #tpu.memory_space<smem>>) -> (i32, i32) {
    %c0_i32 = arith.constant 0 : i32
    %c0_i32_0 = arith.constant 0 : i32
    %c0_i32_1 = arith.constant 0 : i32
    return %c0_i32, %c0_i32_0 : i32, i32
  }
  func.func @transform_5(%arg0: i32, %arg1: memref<1xi32, #tpu.memory_space<smem>>) -> (i32, i32) {
    %c0_i32 = arith.constant 0 : i32
    %c0_i32_0 = arith.constant 0 : i32
    return %arg0, %c0_i32 : i32, i32
  }
  func.func @transform_6(%arg0: i32, %arg1: memref<1xi32, #tpu.memory_space<smem>>) -> (i32, i32) {
    %c0_i32 = arith.constant 0 : i32
    %c0_i32_0 = arith.constant 0 : i32
    return %arg0, %c0_i32 : i32, i32
  }
}

</mosaic_0001>

<bundles_post_ra>
// kernel: tpu_custom_call.1
= control target key start
LH: loop header
LB: loop body
LE: loop exit
PB: predicated region body
PF: predicated region fallthrough
CT: control target
= control target key end

     0   :  { %13 = vsyncpa [#allocation8], 0  ;;  %s2994_s0 = inlined_call_operand.<no memory space> [shape: s32[1], index: 0, kind: input, shape index: {}]   ;;  %s2995_s1 = inlined_call_operand.hbm [shape: bf16[8,16,32], index: 1, kind: input, shape index: {}]   ;;  %s2996_s2 = inlined_call_operand.vmem [shape: s32[16,1], index: 2, kind: input, shape index: {}]   ;;  %s2997_s3 = inlined_call_operand.vmem [shape: bf16[32,128], index: 3, kind: input, shape index: {}]   ;;  %s2998_s4 = inlined_call_operand.vmem [shape: bf16[32,128], index: 4, kind: input, shape index: {}]   ;;  %s2999_s5 = inlined_call_operand.vmem [shape: f32[1,128], index: 5, kind: input, shape index: {}]   ;;  %s3000_s6 = inlined_call_operand.hbm [shape: f32[16,32], index: 6, kind: input, shape index: {}]   ;;  %s3001_s7 = inlined_call_operand.vmem [shape: f32[16,1], index: 7, kind: output, shape index: {}]  }
   0x1   :  { %14 = vsyncpa [#allocation10], 0  ;;  %s2479_s24 = smov [#allocation7]   ;;  %s2431_s28 = scalar_lea.hbm %s2995_s1, 1024 }
   0x2   :  { %s20_s25 = sshll.u32 %s2479_s24, 4  ;;  %p2432_p0 = scmp.ne.s32.totalorder %s2995_s1, %s2431_s28  ;;  %s21_s25 = int_to_ptr.vmem [resolvable:$true] %s20_s25 }
   0x3   :  { %p2435_p1 = scmp.lt.u32.totalorder %s2431_s28, %s2995_s1 }
   0x5   :  { %p2437_p2 = pnand %p2435_p1, %p2432_p0 }
   0x7   :  { %2440 = shalt.err (!%p2437_p2)
}
   0x8   :  { %s2441_s10 = scalar_lea.vmem %s21_s25, 1024  ;;  %p2446_p4 = scmp.lt.s32.totalorder %s21_s25, %s21_s25 }
   0x9   :  { %p2442_p3 = scmp.ne.s32.totalorder %s21_s25, %s2441_s10  ;;  %p2447_p5 = scmp.lt.s32.totalorder %s2441_s10, %s2441_s10 }
   0xb   :  { %p2448_p6 = por %p2447_p5, %p2446_p4 }
   0xd   :  { %p2449_p7 = pnand %p2448_p6, %p2442_p3 }
   0xf   :  { %2452 = shalt.err (!%p2449_p7)
}
  0x10   :  { %s2480_s11 = smov 64   ;;  %s2481_s12 = smov 4  }
  0x11   :  { %26 = dma.hbm_to_vmem [thread:$0]  %s2995_s1, 1024, %s21_s25, [#allocation8], %s2480_s11, %s2480_s11, %s2481_s12  }
  0x12   :  { %s2482_s15 = smov [#allocation9]   ;;  %s2453_s19 = scalar_lea.hbm %s3000_s6, 256 }
  0x13   :  { %s40_s16 = sshll.u32 %s2482_s15, 4  ;;  %p2454_p8 = scmp.ne.s32.totalorder %s3000_s6, %s2453_s19  ;;  %s41_s16 = int_to_ptr.vmem [resolvable:$true] %s40_s16 }
  0x14   :  { %p2457_p9 = scmp.lt.u32.totalorder %s2453_s19, %s3000_s6 }
  0x16   :  { %p2459_p10 = pnand %p2457_p9, %p2454_p8 }
  0x18   :  { %2462 = shalt.err (!%p2459_p10)
}
  0x19   :  { %s2463_s24 = scalar_lea.vmem %s41_s16, 256  ;;  %p2468_p12 = scmp.lt.s32.totalorder %s41_s16, %s41_s16 }
  0x1a   :  { %p2464_p11 = scmp.ne.s32.totalorder %s41_s16, %s2463_s24  ;;  %p2469_p13 = scmp.lt.s32.totalorder %s2463_s24, %s2463_s24 }
  0x1c   :  { %p2470_p0 = por %p2469_p13, %p2468_p12 }
  0x1e   :  { %p2471_p1 = pnand %p2470_p0, %p2464_p11 }
  0x20   :  { %2474 = shalt.err (!%p2471_p1)
}
  0x21   :  { %s2483_s1 = smov 128   ;;  %s2484_s25 = smov 8  }
  0x22   :  { %46 = dma.hbm_to_vmem [thread:$0]  %s3000_s6, 256, %s41_s16, [#allocation10], %s2483_s1, %s2483_s1, %s2484_s25  }
  0x23   :  { %2475 = dma.done.wait [#allocation8], 1024  }
  0x24   :  { %2476 = vsyncadd [#allocation8], 4294966272 }
  0x25   :  { %2477 = dma.done.wait [#allocation10], 256  }
  0x26   :  { %2478 = vsyncadd [#allocation10], 4294967040  ;;  %vm55_vm0 = vcmask 261120   ;;  %v2485_v0 = vmov 0.0   ;;  %v2486_v1 = vmov 0   ;;  %v67_v3 = vld [vmem:[%s2996_s2] sm:$0xff] }
  0x27   :  { %56 = vst.msk [vmem:[#allocation3] sm:$0xff] %vm55_vm0, %v2485_v0  ;;  %57 = vst.msk [vmem:[#allocation3 + $0x8] sm:$0xff] %vm55_vm0, %v2485_v0  ;;  %2326 = vset.pattern.permute.xlu0 %v2486_v1  ;;  %v2614_v2 = vld [vmem:[%s2999_s5] ss:$0 sm:$0xff]  ;;  %v68_v4 = vld [vmem:[%s2996_s2 + $0x8] sm:$0xff]  ;;  %p2014_p2 = scmp.le.s32.totalorder %s2994_s0, 0 }
  0x28   :  { %58 = vst.msk [vmem:[#allocation4] sm:$0xff] %vm55_vm0, %v2485_v0  ;;  %59 = vst.msk [vmem:[#allocation4 + $0x8] sm:$0xff] %vm55_vm0, %v2485_v0  ;;  %70 = vperm.xlu0 %2326, %v67_v3   ;;  %v2327_v7 = vld [vmem:[%s2997_s3] sm:$0xff] (!%p2014_p2)   ;;  %v2487_v8 = vmov (!%p2014_p2), 0.0   ;;  %v2328_v9 = vld [vmem:[%s2997_s3 + $0x8] sm:$0xff] (!%p2014_p2)   ;;  %vm2488_vm1 = vmmov (!%p2014_p2), 0  }
  0x29   :  { %2134 = vmatprep.subr.bf16.mxu0 (!%p2014_p2), %v2487_v8  ;;  %2138 = vmatprep.mubr.msk.bf16.mxu0 (!%p2014_p2), %vm2488_vm1, %v2487_v8  ;;  %v2329_v10 = vld [vmem:[#allocation7] sm:$0xff] (!%p2014_p2)  }
  0x2a   :  { %2135 = vmatpush3.bf16.msra.mxu0 (!%p2014_p2), %v2327_v7 }
  0x2b   :  { %2136 = vmatprep.subr.bf16.mxu0 (!%p2014_p2), %v2487_v8 }
  0x2c   :  { %73 = vperm.xlu0 %2326, %v68_v4  }
  0x2e   :  { %2137 = vmatpush3.bf16.msra.mxu0 (!%p2014_p2), %v2328_v9 }
  0x31   :  { %2139 = vmatmul.mubr.msk.bf16.vlgmr.msra.gmra.mrb[0].mxu0 (!%p2014_p2), %vm55_vm0, %v2329_v10 }
  0xa5   :  { %78 = sbr.rel (%p2014_p2) target bundleno = 266 (0x10a), region = 37 }
  0xa7   :  { %v2622_v5 = vpop.permute.xlu0 %70 }
  0xab   :  { %v2624_v6 = vpop.permute.xlu0 %73 }
 0x104   :  { %v139_v11 = vpop.f32.mrb[0].mxu0 }
 0x105   :  { %v140_v12 = vadd.f32 %v2614_v2, %v139_v11  ;;  %v2140_v13 = vpop.f32.mrb[1].mxu0 }
 0x106   :  { %v142_v14 = vpop.f32.mrb[2].mxu0 }
 0x107   :  { %146 = vst [vmem:[#allocation2] sm:$0xff] %v140_v12  ;;  %v143_v15 = vadd.f32 %v2614_v2, %v142_v14  ;;  %v2141_v16 = vpop.f32.mrb[3].mxu0 }
 0x109   :  { %147 = vst [vmem:[#allocation2 + $0x8] sm:$0xff] %v143_v15 }
 0x10a PF:  { %p2019_p3 = scmp.le.s32.totalorder %s2994_s0, 1 }
 0x10b   :  { %v2330_v17 = vld [vmem:[%s2997_s3] sm:$0xff] (!%p2019_p3)   ;;  %v2489_v18 = vmov (!%p2019_p3), 0.0   ;;  %v2331_v19 = vld [vmem:[%s2997_s3 + $0x8] sm:$0xff] (!%p2019_p3)   ;;  %vm2490_vm2 = vmmov (!%p2019_p3), 0  }
 0x10c   :  { %151 = sbr.rel (%p2019_p3) target bundleno = 493 (0x1ed), region = 41  ;;  %2142 = vmatprep.subr.bf16.mxu0 (!%p2019_p3), %v2489_v18  ;;  %2146 = vmatprep.mubr.msk.bf16.mxu0 (!%p2019_p3), %vm2490_vm2, %v2489_v18  ;;  %v2332_v20 = vld [vmem:[#allocation7 + $0x8] sm:$0xff] (!%p2019_p3)  }
 0x10d   :  { %2143 = vmatpush3.bf16.msra.mxu0 (!%p2019_p3), %v2330_v17 }
 0x10e   :  { %2144 = vmatprep.subr.bf16.mxu0 (!%p2019_p3), %v2489_v18 }
 0x111   :  { %2145 = vmatpush3.bf16.msra.mxu0 (!%p2019_p3), %v2331_v19 }
 0x114   :  { %2147 = vmatmul.mubr.msk.bf16.vlgmr.msra.gmra.mrb[0].mxu0 %vm55_vm0, %v2332_v20 }
 0x1e7   :  { %v213_v21 = vpop.f32.mrb[0].mxu0 }
 0x1e8   :  { %v214_v22 = vadd.f32 %v2614_v2, %v213_v21  ;;  %v2148_v23 = vpop.f32.mrb[1].mxu0 }
 0x1e9   :  { %v216_v24 = vpop.f32.mrb[2].mxu0 }
 0x1ea   :  { %221 = vst [vmem:[#allocation2 + $0x10] sm:$0xff] %v214_v22  ;;  %v217_v25 = vadd.f32 %v2614_v2, %v216_v24  ;;  %v2149_v26 = vpop.f32.mrb[3].mxu0 }
 0x1ec   :  { %222 = vst [vmem:[#allocation2 + $0x18] sm:$0xff] %v217_v25 }
 0x1ed PF:  { %p2024_p4 = scmp.le.s32.totalorder %s2994_s0, 2 }
 0x1ee   :  { %v2333_v27 = vld [vmem:[%s2997_s3] sm:$0xff] (!%p2024_p4)   ;;  %v2491_v28 = vmov (!%p2024_p4), 0.0   ;;  %v2334_v29 = vld [vmem:[%s2997_s3 + $0x8] sm:$0xff] (!%p2024_p4)   ;;  %vm2492_vm3 = vmmov (!%p2024_p4), 0   ;;  %v2335_v30 = vld [vmem:[#allocation7 + $0x10] sm:$0xff] (!%p2024_p4)  }
 0x1ef   :  { %226 = sbr.rel (%p2024_p4) target bundleno = 720 (0x2d0), region = 45  ;;  %2150 = vmatprep.subr.bf16.mxu0 (!%p2024_p4), %v2491_v28  ;;  %2154 = vmatprep.mubr.msk.bf16.mxu0 (!%p2024_p4), %vm2492_vm3, %v2491_v28 }
 0x1f0   :  { %2151 = vmatpush3.bf16.msra.mxu0 (!%p2024_p4), %v2333_v27 }
 0x1f1   :  { %2152 = vmatprep.subr.bf16.mxu0 (!%p2024_p4), %v2491_v28 }
 0x1f4   :  { %2153 = vmatpush3.bf16.msra.mxu0 (!%p2024_p4), %v2334_v29 }
 0x1f7   :  { %2155 = vmatmul.mubr.msk.bf16.vlgmr.msra.gmra.mrb[0].mxu0 %vm55_vm0, %v2335_v30 }
 0x2ca   :  { %v288_v31 = vpop.f32.mrb[0].mxu0 }
 0x2cb   :  { %v289_v32 = vadd.f32 %v2614_v2, %v288_v31  ;;  %v2156_v33 = vpop.f32.mrb[1].mxu0 }
 0x2cc   :  { %v291_v34 = vpop.f32.mrb[2].mxu0 }
 0x2cd   :  { %296 = vst [vmem:[#allocation2 + $0x20] sm:$0xff] %v289_v32  ;;  %v292_v35 = vadd.f32 %v2614_v2, %v291_v34  ;;  %v2157_v36 = vpop.f32.mrb[3].mxu0 }
 0x2cf   :  { %297 = vst [vmem:[#allocation2 + $0x28] sm:$0xff] %v292_v35 }
 0x2d0 PF:  { %p2029_p5 = scmp.le.s32.totalorder %s2994_s0, 3 }
 0x2d1   :  { %v2336_v37 = vld [vmem:[%s2997_s3] sm:$0xff] (!%p2029_p5)   ;;  %v2493_v38 = vmov (!%p2029_p5), 0.0   ;;  %v2337_v39 = vld [vmem:[%s2997_s3 + $0x8] sm:$0xff] (!%p2029_p5)   ;;  %vm2494_vm4 = vmmov (!%p2029_p5), 0   ;;  %v2338_v40 = vld [vmem:[#allocation7 + $0x18] sm:$0xff] (!%p2029_p5)  }
 0x2d2   :  { %301 = sbr.rel (%p2029_p5) target bundleno = 947 (0x3b3), region = 49  ;;  %2158 = vmatprep.subr.bf16.mxu0 (!%p2029_p5), %v2493_v38  ;;  %2162 = vmatprep.mubr.msk.bf16.mxu0 (!%p2029_p5), %vm2494_vm4, %v2493_v38 }
 0x2d3   :  { %2159 = vmatpush3.bf16.msra.mxu0 (!%p2029_p5), %v2336_v37 }
 0x2d4   :  { %2160 = vmatprep.subr.bf16.mxu0 (!%p2029_p5), %v2493_v38 }
 0x2d7   :  { %2161 = vmatpush3.bf16.msra.mxu0 (!%p2029_p5), %v2337_v39 }
 0x2da   :  { %2163 = vmatmul.mubr.msk.bf16.vlgmr.msra.gmra.mrb[0].mxu0 %vm55_vm0, %v2338_v40 }
 0x3ad   :  { %v363_v41 = vpop.f32.mrb[0].mxu0 }
 0x3ae   :  { %v364_v42 = vadd.f32 %v2614_v2, %v363_v41  ;;  %v2164_v43 = vpop.f32.mrb[1].mxu0 }
 0x3af   :  { %v366_v44 = vpop.f32.mrb[2].mxu0 }
 0x3b0   :  { %371 = vst [vmem:[#allocation2 + $0x30] sm:$0xff] %v364_v42  ;;  %v367_v45 = vadd.f32 %v2614_v2, %v366_v44  ;;  %v2165_v46 = vpop.f32.mrb[3].mxu0 }
 0x3b2   :  { %372 = vst [vmem:[#allocation2 + $0x38] sm:$0xff] %v367_v45 }
 0x3b3 PF:  { %p2034_p6 = scmp.le.s32.totalorder %s2994_s0, 4 }
 0x3b4   :  { %v2339_v47 = vld [vmem:[%s2997_s3] sm:$0xff] (!%p2034_p6)   ;;  %v2495_v48 = vmov (!%p2034_p6), 0.0   ;;  %v2340_v49 = vld [vmem:[%s2997_s3 + $0x8] sm:$0xff] (!%p2034_p6)   ;;  %vm2496_vm5 = vmmov (!%p2034_p6), 0  }
 0x3b5   :  { %376 = sbr.rel (%p2034_p6) target bundleno = 1174 (0x496), region = 53  ;;  %2166 = vmatprep.subr.bf16.mxu0 (!%p2034_p6), %v2495_v48  ;;  %2170 = vmatprep.mubr.msk.bf16.mxu0 (!%p2034_p6), %vm2496_vm5, %v2495_v48  ;;  %v2341_v50 = vld [vmem:[#allocation7 + $0x20] sm:$0xff] (!%p2034_p6)  }
 0x3b6   :  { %2167 = vmatpush3.bf16.msra.mxu0 (!%p2034_p6), %v2339_v47 }
 0x3b7   :  { %2168 = vmatprep.subr.bf16.mxu0 (!%p2034_p6), %v2495_v48 }
 0x3ba   :  { %2169 = vmatpush3.bf16.msra.mxu0 (!%p2034_p6), %v2340_v49 }
 0x3bd   :  { %2171 = vmatmul.mubr.msk.bf16.vlgmr.msra.gmra.mrb[0].mxu0 %vm55_vm0, %v2341_v50 }
 0x490   :  { %v438_v51 = vpop.f32.mrb[0].mxu0 }
 0x491   :  { %v439_v52 = vadd.f32 %v2614_v2, %v438_v51  ;;  %v2172_v53 = vpop.f32.mrb[1].mxu0 }
 0x492   :  { %v441_v54 = vpop.f32.mrb[2].mxu0 }
 0x493   :  { %446 = vst [vmem:[#allocation2 + $0x40] sm:$0xff] %v439_v52  ;;  %v442_v55 = vadd.f32 %v2614_v2, %v441_v54  ;;  %v2173_v56 = vpop.f32.mrb[3].mxu0 }
 0x495   :  { %447 = vst [vmem:[#allocation2 + $0x48] sm:$0xff] %v442_v55 }
 0x496 PF:  { %p2039_p7 = scmp.le.s32.totalorder %s2994_s0, 5 }
 0x497   :  { %v2342_v57 = vld [vmem:[%s2997_s3] sm:$0xff] (!%p2039_p7)   ;;  %v2497_v58 = vmov (!%p2039_p7), 0.0   ;;  %v2343_v59 = vld [vmem:[%s2997_s3 + $0x8] sm:$0xff] (!%p2039_p7)   ;;  %vm2498_vm6 = vmmov (!%p2039_p7), 0  }
 0x498   :  { %451 = sbr.rel (%p2039_p7) target bundleno = 1401 (0x579), region = 57  ;;  %2174 = vmatprep.subr.bf16.mxu0 (!%p2039_p7), %v2497_v58  ;;  %2178 = vmatprep.mubr.msk.bf16.mxu0 (!%p2039_p7), %vm2498_vm6, %v2497_v58  ;;  %v2344_v60 = vld [vmem:[#allocation7 + $0x28] sm:$0xff] (!%p2039_p7)  }
 0x499   :  { %2175 = vmatpush3.bf16.msra.mxu0 (!%p2039_p7), %v2342_v57 }
 0x49a   :  { %2176 = vmatprep.subr.bf16.mxu0 (!%p2039_p7), %v2497_v58 }
 0x49d   :  { %2177 = vmatpush3.bf16.msra.mxu0 (!%p2039_p7), %v2343_v59 }
 0x4a0   :  { %2179 = vmatmul.mubr.msk.bf16.vlgmr.msra.gmra.mrb[0].mxu0 %vm55_vm0, %v2344_v60 }
 0x573   :  { %v513_v61 = vpop.f32.mrb[0].mxu0 }
 0x574   :  { %v514_v62 = vadd.f32 %v2614_v2, %v513_v61  ;;  %v2180_v63 = vpop.f32.mrb[1].mxu0 }
 0x575   :  { %v516_v0 = vpop.f32.mrb[2].mxu0 }
 0x576   :  { %521 = vst [vmem:[#allocation2 + $0x50] sm:$0xff] %v514_v62  ;;  %v517_v1 = vadd.f32 %v2614_v2, %v516_v0  ;;  %v2181_v3 = vpop.f32.mrb[3].mxu0 }
 0x578   :  { %522 = vst [vmem:[#allocation2 + $0x58] sm:$0xff] %v517_v1 }
 0x579 PF:  { %p2044_p8 = scmp.le.s32.totalorder %s2994_s0, 6 }
 0x57a   :  { %v2345_v4 = vld [vmem:[%s2997_s3] sm:$0xff] (!%p2044_p8)   ;;  %v2499_v7 = vmov (!%p2044_p8), 0.0   ;;  %v2346_v8 = vld [vmem:[%s2997_s3 + $0x8] sm:$0xff] (!%p2044_p8)   ;;  %vm2500_vm7 = vmmov (!%p2044_p8), 0   ;;  %v2347_v9 = vld [vmem:[#allocation7 + $0x30] sm:$0xff] (!%p2044_p8)  }
 0x57b   :  { %526 = sbr.rel (%p2044_p8) target bundleno = 1628 (0x65c), region = 61  ;;  %2182 = vmatprep.subr.bf16.mxu0 (!%p2044_p8), %v2499_v7  ;;  %2186 = vmatprep.mubr.msk.bf16.mxu0 (!%p2044_p8), %vm2500_vm7, %v2499_v7 }
 0x57c   :  { %2183 = vmatpush3.bf16.msra.mxu0 (!%p2044_p8), %v2345_v4 }
 0x57d   :  { %2184 = vmatprep.subr.bf16.mxu0 (!%p2044_p8), %v2499_v7 }
 0x580   :  { %2185 = vmatpush3.bf16.msra.mxu0 (!%p2044_p8), %v2346_v8 }
 0x583   :  { %2187 = vmatmul.mubr.msk.bf16.vlgmr.msra.gmra.mrb[0].mxu0 %vm55_vm0, %v2347_v9 }
 0x656   :  { %v588_v10 = vpop.f32.mrb[0].mxu0 }
 0x657   :  { %v589_v11 = vadd.f32 %v2614_v2, %v588_v10  ;;  %v2188_v12 = vpop.f32.mrb[1].mxu0 }
 0x658   :  { %v591_v13 = vpop.f32.mrb[2].mxu0 }
 0x659   :  { %596 = vst [vmem:[#allocation2 + $0x60] sm:$0xff] %v589_v11  ;;  %v592_v14 = vadd.f32 %v2614_v2, %v591_v13  ;;  %v2189_v15 = vpop.f32.mrb[3].mxu0 }
 0x65b   :  { %597 = vst [vmem:[#allocation2 + $0x68] sm:$0xff] %v592_v14 }
 0x65c PF:  { %p2049_p9 = scmp.le.s32.totalorder %s2994_s0, 7 }
 0x65d   :  { %v2348_v16 = vld [vmem:[%s2997_s3] sm:$0xff] (!%p2049_p9)   ;;  %v2501_v17 = vmov (!%p2049_p9), 0.0   ;;  %v2349_v18 = vld [vmem:[%s2997_s3 + $0x8] sm:$0xff] (!%p2049_p9)   ;;  %vm2502_vm8 = vmmov (!%p2049_p9), 0   ;;  %v2350_v19 = vld [vmem:[#allocation7 + $0x38] sm:$0xff] (!%p2049_p9)  }
 0x65e   :  { %601 = sbr.rel (%p2049_p9) target bundleno = 1855 (0x73f), region = 65  ;;  %2190 = vmatprep.subr.bf16.mxu0 (!%p2049_p9), %v2501_v17  ;;  %2194 = vmatprep.mubr.msk.bf16.mxu0 (!%p2049_p9), %vm2502_vm8, %v2501_v17 }
 0x65f   :  { %2191 = vmatpush3.bf16.msra.mxu0 (!%p2049_p9), %v2348_v16 }
 0x660   :  { %2192 = vmatprep.subr.bf16.mxu0 (!%p2049_p9), %v2501_v17 }
 0x663   :  { %2193 = vmatpush3.bf16.msra.mxu0 (!%p2049_p9), %v2349_v18 }
 0x666   :  { %2195 = vmatmul.mubr.msk.bf16.vlgmr.msra.gmra.mrb[0].mxu0 %vm55_vm0, %v2350_v19 }
 0x739   :  { %v663_v20 = vpop.f32.mrb[0].mxu0 }
 0x73a   :  { %v664_v21 = vadd.f32 %v2614_v2, %v663_v20  ;;  %v2196_v22 = vpop.f32.mrb[1].mxu0 }
 0x73b   :  { %v666_v23 = vpop.f32.mrb[2].mxu0 }
 0x73c   :  { %671 = vst [vmem:[#allocation2 + $0x70] sm:$0xff] %v664_v21  ;;  %v667_v24 = vadd.f32 %v2614_v2, %v666_v23  ;;  %v2197_v25 = vpop.f32.mrb[3].mxu0 }
 0x73e   :  { %672 = vst [vmem:[#allocation2 + $0x78] sm:$0xff] %v667_v24 }
 0x73f PF:  { %675 = sbr.rel (%p2014_p2) target bundleno = 2576 (0xa10), region = 69  ;;  %v2351_v26 = vld [vmem:[%s2998_s4] sm:$0xff] (!%p2014_p2)   ;;  %v2503_v27 = vmov (!%p2014_p2), 0.0   ;;  %v2352_v28 = vld [vmem:[%s2998_s4 + $0x8] sm:$0xff] (!%p2014_p2)   ;;  %vm2504_vm9 = vmmov (!%p2014_p2), 0   ;;  %v749_v30 = vld [vmem:[#allocation4] sm:$0xff] (!%p2014_p2) }
 0x740   :  { %2198 = vmatprep.subr.bf16.mxu0 (!%p2014_p2), %v2503_v27  ;;  %2202 = vmatprep.mubr.msk.bf16.mxu0 (!%p2014_p2), %vm2504_vm9, %v2503_v27  ;;  %v678_v2 = vld [vmem:[#allocation3] sm:$0xff] (!%p2014_p2)  ;;  %v679_v29 = vld [vmem:[#allocation3 + $0x8] sm:$0xff] (!%p2014_p2)  ;;  %s2505_s23 = smov (!%p2014_p2), 32   ;;  %v750_v31 = vld [vmem:[#allocation4 + $0x8] sm:$0xff] (!%p2014_p2)  ;;  %s2506_s24 = smov (!%p2014_p2), 64   ;;  %vm793_vm10 = vcmp.gt.s32.totalorder (!%p2014_p2), %v2622_v5, 0 }
 0x741   :  { %2199 = vmatpush3.bf16.msra.mxu0 (!%p2014_p2), %v2351_v26  ;;  %753 = vrot.lane.b32.xlu1 (!%p2014_p2), %v749_v30, %s2505_s23  ;;  %v680_v32 = vpack.c.bf16 (!%p2014_p2), %v679_v29, %v678_v2  ;;  %v676_v33 = vld [vmem:[#allocation2] sm:$0xff] (!%p2014_p2)  ;;  %v677_v35 = vld [vmem:[#allocation2 + $0x8] sm:$0xff] (!%p2014_p2)  ;;  %s2507_s1 = smov (!%p2014_p2), 96   ;;  %vm794_vm11 = vcmp.gt.s32.totalorder (!%p2014_p2), %v2624_v6, 0 }
 0x742   :  { %2200 = vmatprep.subr.bf16.mxu0 (!%p2014_p2), %v2503_v27 }
 0x745   :  { %2201 = vmatpush3.bf16.msra.mxu0 (!%p2014_p2), %v2352_v28  ;;  %755 = vrot.lane.b32.xlu1 (!%p2014_p2), %v750_v31, %s2505_s23 }
 0x748   :  { %2203 = vmatmul.mubr.msk.bf16.vlgmr.msra.gmra.mrb[0].mxu0 %vm55_vm0, %v680_v32 }
 0x7b3   :  { %v754_v51 = vpop.permute.xlu1 %753 }
 0x7b7   :  { %v756_v53 = vpop.permute.xlu1 %755 }
 0x81b   :  { %v734_v34 = vpop.f32.mrb[0].mxu0 }
 0x81c   :  { %v741_v36 = vadd.f32 %v734_v34, %v676_v33  ;;  %v2204_v37 = vpop.f32.mrb[1].mxu0 }
 0x81d   :  { %v737_v38 = vpop.f32.mrb[2].mxu0 }
 0x81e   :  { %2353 = vtanh.f32 %v741_v36  ;;  %v742_v39 = vadd.f32 %v737_v38, %v677_v35  ;;  %v2205_v40 = vpop.f32.mrb[3].mxu0 }
 0x820   :  { %2355 = vtanh.f32 %v742_v39 }
 0x828   :  { %v2354_v41 = vpop.eup %2353 }
 0x829   :  { %763 = vrot.lane.b32.xlu0 %v2354_v41, %s2506_s24  ;;  %v745_v43 = vmul.f32 0.5, %v2354_v41 }
 0x82a   :  { %v2356_v42 = vpop.eup %2355 }
 0x82b   :  { %v747_v44 = vadd.f32 0.5, %v745_v43  ;;  %v746_v45 = vmul.f32 0.5, %v2356_v42 }
 0x82d   :  { %765 = vrot.lane.b32.xlu0 %v2356_v42, %s2506_s24  ;;  %v748_v48 = vadd.f32 0.5, %v746_v45  ;;  %v759_v52 = vmul.f32 %v754_v51, %v747_v44 }
 0x82f   :  { %v760_v56 = vmul.f32 %v756_v53, %v748_v48 }
 0x89b   :  { %v764_v46 = vpop.permute.xlu0 %763 }
 0x89c   :  { %v769_v47 = vmul.f32 %v764_v46, %v747_v44 }
 0x89e   :  { %773 = vrot.lane.b32.xlu0 %v769_v47, %s2505_s23 }
 0x89f   :  { %v766_v49 = vpop.permute.xlu0 %765 }
 0x8a0   :  { %v770_v50 = vmul.f32 %v766_v49, %v748_v48 }
 0x8a2   :  { %775 = vrot.lane.b32.xlu1 %v770_v50, %s2505_s23  ;;  %797 = vrot.lane.b32.xlu0 %v678_v2, %s2507_s1 }
 0x8a6   :  { %799 = vrot.lane.b32.xlu1 %v679_v29, %s2507_s1 }
 0x910   :  { %v774_v54 = vpop.permute.xlu0 %773 }
 0x911   :  { %v779_v55 = vadd.f32 %v774_v54, %v759_v52 }
 0x913   :  { %2357 = vtanh.f32 %v779_v55 }
 0x914   :  { %v776_v57 = vpop.permute.xlu1 %775  ;;  %v798_v61 = vpop.permute.xlu0 %797 }
 0x915   :  { %v780_v58 = vadd.f32 %v776_v57, %v760_v56 }
 0x917   :  { %2359 = vtanh.f32 %v780_v58 }
 0x918   :  { %v800_v62 = vpop.permute.xlu1 %799 }
 0x91d   :  { %v2358_v59 = vpop.eup %2357 }
 0x91e   :  { %785 = vrot.lane.b32.xlu0 %v2358_v59, %s2506_s24 }
 0x921   :  { %v2360_v60 = vpop.eup %2359 }
 0x922   :  { %787 = vrot.lane.b32.xlu1 %v2360_v60, %s2506_s24  ;;  %819 = vrot.lane.b32.xlu0 %v749_v30, %s2505_s23 }
 0x926   :  { %821 = vrot.lane.b32.xlu1 %v750_v31, %s2505_s23 }
 0x990   :  { %v786_v63 = vpop.permute.xlu0 %785 }
 0x991   :  { %v791_v0 = vmul.f32 %v786_v63, %v747_v44 }
 0x993   :  { %v803_v1 = vsel %vm793_vm10, %v791_v0, %v798_v61 }
 0x994   :  { %v788_v3 = vpop.permute.xlu1 %787  ;;  %807 = vrot.lane.b32.xlu0 %v803_v1, %s2505_s23  ;;  %v820_v4 = vpop.permute.xlu0 %819 }
 0x995   :  { %v792_v7 = vmul.f32 %v788_v3, %v748_v48  ;;  %v825_v9 = vsel %vm793_vm10, %v779_v55, %v820_v4 }
 0x997   :  { %v804_v8 = vsel %vm794_vm11, %v792_v7, %v800_v62 }
 0x998   :  { %809 = vrot.lane.b32.xlu1 %v804_v8, %s2505_s23  ;;  %v822_v10 = vpop.permute.xlu1 %821  ;;  %829 = vrot.lane.b32.xlu0 %v825_v9, %s2507_s1 }
 0x999   :  { %v826_v11 = vsel %vm794_vm11, %v780_v58, %v822_v10 }
 0x99c   :  { %831 = vrot.lane.b32.xlu1 %v826_v11, %s2507_s1 }
 0xa06   :  { %v808_v12 = vpop.permute.xlu0 %807 }
 0xa07   :  { %813 = vst.msk [vmem:[#allocation3] sm:$0xff] %vm55_vm0, %v808_v12 }
 0xa0a   :  { %v810_v13 = vpop.permute.xlu1 %809  ;;  %v830_v14 = vpop.permute.xlu0 %829 }
 0xa0b   :  { %814 = vst.msk [vmem:[#allocation3 + $0x8] sm:$0xff] %vm55_vm0, %v810_v13  ;;  %835 = vst.msk [vmem:[#allocation4] sm:$0xff] %vm55_vm0, %v830_v14 }
 0xa0e   :  { %v832_v15 = vpop.permute.xlu1 %831 }
 0xa0f   :  { %836 = vst.msk [vmem:[#allocation4 + $0x8] sm:$0xff] %vm55_vm0, %v832_v15 }
 0xa10 PF:  { %839 = sbr.rel (%p2019_p3) target bundleno = 3297 (0xce1), region = 73  ;;  %v2361_v16 = vld [vmem:[%s2998_s4] sm:$0xff] (!%p2019_p3)   ;;  %v2508_v17 = vmov (!%p2019_p3), 0.0   ;;  %v2362_v18 = vld [vmem:[%s2998_s4 + $0x8] sm:$0xff] (!%p2019_p3)   ;;  %vm2509_vm12 = vmmov (!%p2019_p3), 0   ;;  %s2510_s30 = smov (!%p2019_p3), 32  }
 0xa11   :  { %2206 = vmatprep.subr.bf16.mxu0 (!%p2019_p3), %v2508_v17  ;;  %2210 = vmatprep.mubr.msk.bf16.mxu0 (!%p2019_p3), %vm2509_vm12, %v2508_v17  ;;  %v843_v19 = vld [vmem:[#allocation3] sm:$0xff] (!%p2019_p3)  ;;  %v841_v24 = vld [vmem:[#allocation2 + $0x10] sm:$0xff] (!%p2019_p3)  ;;  %v842_v26 = vld [vmem:[#allocation2 + $0x18] sm:$0xff] (!%p2019_p3)  ;;  %s2511_s8 = smov (!%p2019_p3), 64   ;;  %s2512_s9 = smov (!%p2019_p3), 96   ;;  %vm958_vm13 = vcmp.gt.s32.totalorder (!%p2019_p3), %v2622_v5, 1 }
 0xa12   :  { %2207 = vmatpush3.bf16.msra.mxu0 (!%p2019_p3), %v2361_v16  ;;  %v844_v20 = vld [vmem:[#allocation3 + $0x8] sm:$0xff] (!%p2019_p3)  ;;  %v914_v21 = vld [vmem:[#allocation4] sm:$0xff] (!%p2019_p3)  ;;  %vm959_vm14 = vcmp.gt.s32.totalorder (!%p2019_p3), %v2624_v6, 1 }
 0xa13   :  { %2208 = vmatprep.subr.bf16.mxu0 (!%p2019_p3), %v2508_v17  ;;  %918 = vrot.lane.b32.xlu1 (!%p2019_p3), %v914_v21, %s2510_s30  ;;  %v845_v23 = vpack.c.bf16 (!%p2019_p3), %v844_v20, %v843_v19 }
 0xa16   :  { %v915_v22 = vld [vmem:[#allocation4 + $0x8] sm:$0xff] (!%p2019_p3)  ;;  %2209 = vmatpush3.bf16.msra.mxu0 (!%p2019_p3), %v2362_v18 }
 0xa17   :  { %920 = vrot.lane.b32.xlu1 %v915_v22, %s2510_s30 }
 0xa19   :  { %2211 = vmatmul.mubr.msk.bf16.vlgmr.msra.gmra.mrb[0].mxu0 %vm55_vm0, %v845_v23 }
 0xa85   :  { %v919_v41 = vpop.permute.xlu1 %918 }
 0xa89   :  { %v921_v43 = vpop.permute.xlu1 %920 }
 0xaec   :  { %v899_v25 = vpop.f32.mrb[0].mxu0 }
 0xaed   :  { %v906_v27 = vadd.f32 %v899_v25, %v841_v24  ;;  %v2212_v28 = vpop.f32.mrb[1].mxu0 }
 0xaee   :  { %v902_v2 = vpop.f32.mrb[2].mxu0 }
 0xaef   :  { %2363 = vtanh.f32 %v906_v27  ;;  %v907_v29 = vadd.f32 %v902_v2, %v842_v26  ;;  %v2213_v30 = vpop.f32.mrb[3].mxu0 }
 0xaf1   :  { %2365 = vtanh.f32 %v907_v29 }
 0xaf9   :  { %v2364_v31 = vpop.eup %2363 }
 0xafa   :  { %928 = vrot.lane.b32.xlu0 %v2364_v31, %s2511_s8  ;;  %v910_v33 = vmul.f32 0.5, %v2364_v31 }
 0xafb   :  { %v2366_v32 = vpop.eup %2365 }
 0xafc   :  { %v912_v34 = vadd.f32 0.5, %v910_v33  ;;  %v911_v35 = vmul.f32 0.5, %v2366_v32 }
 0xafe   :  { %930 = vrot.lane.b32.xlu0 %v2366_v32, %s2511_s8  ;;  %v913_v38 = vadd.f32 0.5, %v911_v35  ;;  %v924_v42 = vmul.f32 %v919_v41, %v912_v34 }
 0xb00   :  { %v925_v46 = vmul.f32 %v921_v43, %v913_v38 }
 0xb6c   :  { %v929_v36 = vpop.permute.xlu0 %928 }
 0xb6d   :  { %v934_v37 = vmul.f32 %v929_v36, %v912_v34 }
 0xb6f   :  { %938 = vrot.lane.b32.xlu0 %v934_v37, %s2510_s30 }
 0xb70   :  { %v931_v39 = vpop.permute.xlu0 %930 }
 0xb71   :  { %v935_v40 = vmul.f32 %v931_v39, %v913_v38 }
 0xb73   :  { %940 = vrot.lane.b32.xlu1 %v935_v40, %s2510_s30  ;;  %962 = vrot.lane.b32.xlu0 %v843_v19, %s2512_s9 }
 0xb77   :  { %964 = vrot.lane.b32.xlu1 %v844_v20, %s2512_s9 }
 0xbe1   :  { %v939_v44 = vpop.permute.xlu0 %938 }
 0xbe2   :  { %v944_v45 = vadd.f32 %v939_v44, %v924_v42 }
 0xbe4   :  { %2367 = vtanh.f32 %v944_v45 }
 0xbe5   :  { %v941_v47 = vpop.permute.xlu1 %940  ;;  %v963_v51 = vpop.permute.xlu0 %962 }
 0xbe6   :  { %v945_v48 = vadd.f32 %v941_v47, %v925_v46 }
 0xbe8   :  { %2369 = vtanh.f32 %v945_v48 }
 0xbe9   :  { %v965_v52 = vpop.permute.xlu1 %964 }
 0xbee   :  { %v2368_v49 = vpop.eup %2367 }
 0xbef   :  { %950 = vrot.lane.b32.xlu0 %v2368_v49, %s2511_s8 }
 0xbf2   :  { %v2370_v50 = vpop.eup %2369 }
 0xbf3   :  { %952 = vrot.lane.b32.xlu1 %v2370_v50, %s2511_s8  ;;  %984 = vrot.lane.b32.xlu0 %v914_v21, %s2510_s30 }
 0xbf7   :  { %986 = vrot.lane.b32.xlu1 %v915_v22, %s2510_s30 }
 0xc61   :  { %v951_v53 = vpop.permute.xlu0 %950 }
 0xc62   :  { %v956_v54 = vmul.f32 %v951_v53, %v912_v34 }
 0xc64   :  { %v968_v55 = vsel %vm958_vm13, %v956_v54, %v963_v51 }
 0xc65   :  { %v953_v56 = vpop.permute.xlu1 %952  ;;  %972 = vrot.lane.b32.xlu0 %v968_v55, %s2510_s30  ;;  %v985_v57 = vpop.permute.xlu0 %984 }
 0xc66   :  { %v957_v58 = vmul.f32 %v953_v56, %v913_v38  ;;  %v990_v60 = vsel %vm958_vm13, %v944_v45, %v985_v57 }
 0xc68   :  { %v969_v59 = vsel %vm959_vm14, %v957_v58, %v965_v52 }
 0xc69   :  { %974 = vrot.lane.b32.xlu1 %v969_v59, %s2510_s30  ;;  %v987_v61 = vpop.permute.xlu1 %986  ;;  %994 = vrot.lane.b32.xlu0 %v990_v60, %s2512_s9 }
 0xc6a   :  { %v991_v62 = vsel %vm959_vm14, %v945_v48, %v987_v61 }
 0xc6d   :  { %996 = vrot.lane.b32.xlu1 %v991_v62, %s2512_s9 }
 0xcd7   :  { %v973_v63 = vpop.permute.xlu0 %972 }
 0xcd8   :  { %978 = vst.msk [vmem:[#allocation3] sm:$0xff] %vm55_vm0, %v973_v63 }
 0xcdb   :  { %v975_v0 = vpop.permute.xlu1 %974  ;;  %v995_v1 = vpop.permute.xlu0 %994 }
 0xcdc   :  { %979 = vst.msk [vmem:[#allocation3 + $0x8] sm:$0xff] %vm55_vm0, %v975_v0  ;;  %1000 = vst.msk [vmem:[#allocation4] sm:$0xff] %vm55_vm0, %v995_v1 }
 0xcdf   :  { %v997_v3 = vpop.permute.xlu1 %996 }
 0xce0   :  { %1001 = vst.msk [vmem:[#allocation4 + $0x8] sm:$0xff] %vm55_vm0, %v997_v3 }
 0xce1 PF:  { %1004 = sbr.rel (%p2024_p4) target bundleno = 4018 (0xfb2), region = 77  ;;  %v2371_v4 = vld [vmem:[%s2998_s4] sm:$0xff] (!%p2024_p4)   ;;  %v2513_v7 = vmov (!%p2024_p4), 0.0   ;;  %v2372_v8 = vld [vmem:[%s2998_s4 + $0x8] sm:$0xff] (!%p2024_p4)   ;;  %vm2514_vm15 = vmmov (!%p2024_p4), 0   ;;  %s2515_s2 = smov (!%p2024_p4), 32  }
 0xce2   :  { %2214 = vmatprep.subr.bf16.mxu0 (!%p2024_p4), %v2513_v7  ;;  %2218 = vmatprep.mubr.msk.bf16.mxu0 (!%p2024_p4), %vm2514_vm15, %v2513_v7  ;;  %v1008_v9 = vld [vmem:[#allocation3] sm:$0xff] (!%p2024_p4)  ;;  %v1007_v16 = vld [vmem:[#allocation2 + $0x28] sm:$0xff] (!%p2024_p4)  ;;  %s2516_s15 = smov (!%p2024_p4), 64   ;;  %s2517_s16 = smov (!%p2024_p4), 96   ;;  %vm1123_vm1 = vcmp.gt.s32.totalorder (!%p2024_p4), %v2622_v5, 2  ;;  %vm1124_vm2 = vcmp.gt.s32.totalorder (!%p2024_p4), %v2624_v6, 2 }
 0xce3   :  { %2215 = vmatpush3.bf16.msra.mxu0 (!%p2024_p4), %v2371_v4  ;;  %v1009_v10 = vld [vmem:[#allocation3 + $0x8] sm:$0xff] (!%p2024_p4)  ;;  %v1079_v11 = vld [vmem:[#allocation4] sm:$0xff] (!%p2024_p4)  ;;  %v1006_v14 = vld [vmem:[#allocation2 + $0x20] sm:$0xff] (!%p2024_p4) }
 0xce4   :  { %2216 = vmatprep.subr.bf16.mxu0 (!%p2024_p4), %v2513_v7  ;;  %1083 = vrot.lane.b32.xlu1 (!%p2024_p4), %v1079_v11, %s2515_s2  ;;  %v1010_v13 = vpack.c.bf16 (!%p2024_p4), %v1009_v10, %v1008_v9 }
 0xce7   :  { %v1080_v12 = vld [vmem:[#allocation4 + $0x8] sm:$0xff] (!%p2024_p4)  ;;  %2217 = vmatpush3.bf16.msra.mxu0 (!%p2024_p4), %v2372_v8 }
 0xce8   :  { %1085 = vrot.lane.b32.xlu1 %v1080_v12, %s2515_s2 }
 0xcea   :  { %2219 = vmatmul.mubr.msk.bf16.vlgmr.msra.gmra.mrb[0].mxu0 %vm55_vm0, %v1010_v13 }
 0xd56   :  { %v1084_v31 = vpop.permute.xlu1 %1083 }
 0xd5a   :  { %v1086_v33 = vpop.permute.xlu1 %1085 }
 0xdbd   :  { %v1064_v15 = vpop.f32.mrb[0].mxu0 }
 0xdbe   :  { %v1071_v17 = vadd.f32 %v1064_v15, %v1006_v14  ;;  %v2220_v18 = vpop.f32.mrb[1].mxu0 }
 0xdbf   :  { %v1067_v19 = vpop.f32.mrb[2].mxu0 }
 0xdc0   :  { %2373 = vtanh.f32 %v1071_v17  ;;  %v1072_v20 = vadd.f32 %v1067_v19, %v1007_v16  ;;  %v2221_v21 = vpop.f32.mrb[3].mxu0 }
 0xdc2   :  { %2375 = vtanh.f32 %v1072_v20 }
 0xdca   :  { %v2374_v22 = vpop.eup %2373 }
 0xdcb   :  { %1093 = vrot.lane.b32.xlu0 %v2374_v22, %s2516_s15  ;;  %v1075_v24 = vmul.f32 0.5, %v2374_v22 }
 0xdcc   :  { %v2376_v23 = vpop.eup %2375 }
 0xdcd   :  { %v1077_v25 = vadd.f32 0.5, %v1075_v24  ;;  %v1076_v26 = vmul.f32 0.5, %v2376_v23 }
 0xdcf   :  { %1095 = vrot.lane.b32.xlu0 %v2376_v23, %s2516_s15  ;;  %v1078_v2 = vadd.f32 0.5, %v1076_v26  ;;  %v1089_v32 = vmul.f32 %v1084_v31, %v1077_v25 }
 0xdd1   :  { %v1090_v36 = vmul.f32 %v1086_v33, %v1078_v2 }
 0xe3d   :  { %v1094_v27 = vpop.permute.xlu0 %1093 }
 0xe3e   :  { %v1099_v28 = vmul.f32 %v1094_v27, %v1077_v25 }
 0xe40   :  { %1103 = vrot.lane.b32.xlu0 %v1099_v28, %s2515_s2 }
 0xe41   :  { %v1096_v29 = vpop.permute.xlu0 %1095 }
 0xe42   :  { %v1100_v30 = vmul.f32 %v1096_v29, %v1078_v2 }
 0xe44   :  { %1105 = vrot.lane.b32.xlu1 %v1100_v30, %s2515_s2  ;;  %1127 = vrot.lane.b32.xlu0 %v1008_v9, %s2517_s16 }
 0xe48   :  { %1129 = vrot.lane.b32.xlu1 %v1009_v10, %s2517_s16 }
 0xeb2   :  { %v1104_v34 = vpop.permute.xlu0 %1103 }
 0xeb3   :  { %v1109_v35 = vadd.f32 %v1104_v34, %v1089_v32 }
 0xeb5   :  { %2377 = vtanh.f32 %v1109_v35 }
 0xeb6   :  { %v1106_v37 = vpop.permute.xlu1 %1105  ;;  %v1128_v41 = vpop.permute.xlu0 %1127 }
 0xeb7   :  { %v1110_v38 = vadd.f32 %v1106_v37, %v1090_v36 }
 0xeb9   :  { %2379 = vtanh.f32 %v1110_v38 }
 0xeba   :  { %v1130_v42 = vpop.permute.xlu1 %1129 }
 0xebf   :  { %v2378_v39 = vpop.eup %2377 }
 0xec0   :  { %1115 = vrot.lane.b32.xlu0 %v2378_v39, %s2516_s15 }
 0xec3   :  { %v2380_v40 = vpop.eup %2379 }
 0xec4   :  { %1117 = vrot.lane.b32.xlu1 %v2380_v40, %s2516_s15  ;;  %1149 = vrot.lane.b32.xlu0 %v1079_v11, %s2515_s2 }
 0xec8   :  { %1151 = vrot.lane.b32.xlu1 %v1080_v12, %s2515_s2 }
 0xf32   :  { %v1116_v43 = vpop.permute.xlu0 %1115 }
 0xf33   :  { %v1121_v44 = vmul.f32 %v1116_v43, %v1077_v25 }
 0xf35   :  { %v1133_v45 = vsel %vm1123_vm1, %v1121_v44, %v1128_v41 }
 0xf36   :  { %v1118_v46 = vpop.permute.xlu1 %1117  ;;  %1137 = vrot.lane.b32.xlu0 %v1133_v45, %s2515_s2  ;;  %v1150_v47 = vpop.permute.xlu0 %1149 }
 0xf37   :  { %v1122_v48 = vmul.f32 %v1118_v46, %v1078_v2  ;;  %v1155_v50 = vsel %vm1123_vm1, %v1109_v35, %v1150_v47 }
 0xf39   :  { %v1134_v49 = vsel %vm1124_vm2, %v1122_v48, %v1130_v42 }
 0xf3a   :  { %1139 = vrot.lane.b32.xlu1 %v1134_v49, %s2515_s2  ;;  %v1152_v51 = vpop.permute.xlu1 %1151  ;;  %1159 = vrot.lane.b32.xlu0 %v1155_v50, %s2517_s16 }
 0xf3b   :  { %v1156_v52 = vsel %vm1124_vm2, %v1110_v38, %v1152_v51 }
 0xf3e   :  { %1161 = vrot.lane.b32.xlu1 %v1156_v52, %s2517_s16 }
 0xfa8   :  { %v1138_v53 = vpop.permute.xlu0 %1137 }
 0xfa9   :  { %1143 = vst.msk [vmem:[#allocation3] sm:$0xff] %vm55_vm0, %v1138_v53 }
 0xfac   :  { %v1140_v54 = vpop.permute.xlu1 %1139  ;;  %v1160_v55 = vpop.permute.xlu0 %1159 }
 0xfad   :  { %1144 = vst.msk [vmem:[#allocation3 + $0x8] sm:$0xff] %vm55_vm0, %v1140_v54  ;;  %1165 = vst.msk [vmem:[#allocation4] sm:$0xff] %vm55_vm0, %v1160_v55 }
 0xfb0   :  { %v1162_v56 = vpop.permute.xlu1 %1161 }
 0xfb1   :  { %1166 = vst.msk [vmem:[#allocation4 + $0x8] sm:$0xff] %vm55_vm0, %v1162_v56 }
 0xfb2 PF:  { %1169 = sbr.rel (%p2029_p5) target bundleno = 4739 (0x1283), region = 81  ;;  %v2381_v57 = vld [vmem:[%s2998_s4] sm:$0xff] (!%p2029_p5)   ;;  %v2518_v58 = vmov (!%p2029_p5), 0.0   ;;  %v2382_v59 = vld [vmem:[%s2998_s4 + $0x8] sm:$0xff] (!%p2029_p5)   ;;  %vm2519_vm3 = vmmov (!%p2029_p5), 0   ;;  %s2520_s22 = smov (!%p2029_p5), 32  }
 0xfb3   :  { %2222 = vmatprep.subr.bf16.mxu0 (!%p2029_p5), %v2518_v58  ;;  %2226 = vmatprep.mubr.msk.bf16.mxu0 (!%p2029_p5), %vm2519_vm3, %v2518_v58  ;;  %v1173_v60 = vld [vmem:[#allocation3] sm:$0xff] (!%p2029_p5)  ;;  %v1171_v1 = vld [vmem:[#allocation2 + $0x30] sm:$0xff] (!%p2029_p5)  ;;  %v1172_v4 = vld [vmem:[#allocation2 + $0x38] sm:$0xff] (!%p2029_p5)  ;;  %s2521_s23 = smov (!%p2029_p5), 64   ;;  %s2522_s24 = smov (!%p2029_p5), 96   ;;  %vm1288_vm4 = vcmp.gt.s32.totalorder (!%p2029_p5), %v2622_v5, 3 }
 0xfb4   :  { %2223 = vmatpush3.bf16.msra.mxu0 (!%p2029_p5), %v2381_v57  ;;  %v1174_v61 = vld [vmem:[#allocation3 + $0x8] sm:$0xff] (!%p2029_p5)  ;;  %v1244_v62 = vld [vmem:[#allocation4] sm:$0xff] (!%p2029_p5)  ;;  %vm1289_vm5 = vcmp.gt.s32.totalorder (!%p2029_p5), %v2624_v6, 3 }
 0xfb5   :  { %2224 = vmatprep.subr.bf16.mxu0 (!%p2029_p5), %v2518_v58  ;;  %1248 = vrot.lane.b32.xlu1 (!%p2029_p5), %v1244_v62, %s2520_s22  ;;  %v1175_v0 = vpack.c.bf16 (!%p2029_p5), %v1174_v61, %v1173_v60 }
 0xfb8   :  { %v1245_v63 = vld [vmem:[#allocation4 + $0x8] sm:$0xff] (!%p2029_p5)  ;;  %2225 = vmatpush3.bf16.msra.mxu0 (!%p2029_p5), %v2382_v59 }
 0xfb9   :  { %1250 = vrot.lane.b32.xlu1 %v1245_v63, %s2520_s22 }
 0xfbb   :  { %2227 = vmatmul.mubr.msk.bf16.vlgmr.msra.gmra.mrb[0].mxu0 %vm55_vm0, %v1175_v0 }
0x1027   :  { %v1249_v22 = vpop.permute.xlu1 %1248 }
0x102b   :  { %v1251_v24 = vpop.permute.xlu1 %1250 }
0x108e   :  { %v1229_v3 = vpop.f32.mrb[0].mxu0 }
0x108f   :  { %v1236_v7 = vadd.f32 %v1229_v3, %v1171_v1  ;;  %v2228_v8 = vpop.f32.mrb[1].mxu0 }
0x1090   :  { %v1232_v9 = vpop.f32.mrb[2].mxu0 }
0x1091   :  { %2383 = vtanh.f32 %v1236_v7  ;;  %v1237_v10 = vadd.f32 %v1232_v9, %v1172_v4  ;;  %v2229_v11 = vpop.f32.mrb[3].mxu0 }
0x1093   :  { %2385 = vtanh.f32 %v1237_v10 }
0x109b   :  { %v2384_v12 = vpop.eup %2383 }
0x109c   :  { %1258 = vrot.lane.b32.xlu0 %v2384_v12, %s2521_s23  ;;  %v1240_v14 = vmul.f32 0.5, %v2384_v12 }
0x109d   :  { %v2386_v13 = vpop.eup %2385 }
0x109e   :  { %v1242_v15 = vadd.f32 0.5, %v1240_v14  ;;  %v1241_v16 = vmul.f32 0.5, %v2386_v13 }
0x10a0   :  { %1260 = vrot.lane.b32.xlu0 %v2386_v13, %s2521_s23  ;;  %v1243_v19 = vadd.f32 0.5, %v1241_v16  ;;  %v1254_v23 = vmul.f32 %v1249_v22, %v1242_v15 }
0x10a2   :  { %v1255_v27 = vmul.f32 %v1251_v24, %v1243_v19 }
0x110e   :  { %v1259_v17 = vpop.permute.xlu0 %1258 }
0x110f   :  { %v1264_v18 = vmul.f32 %v1259_v17, %v1242_v15 }
0x1111   :  { %1268 = vrot.lane.b32.xlu0 %v1264_v18, %s2520_s22 }
0x1112   :  { %v1261_v20 = vpop.permute.xlu0 %1260 }
0x1113   :  { %v1265_v21 = vmul.f32 %v1261_v20, %v1243_v19 }
0x1115   :  { %1270 = vrot.lane.b32.xlu1 %v1265_v21, %s2520_s22  ;;  %1292 = vrot.lane.b32.xlu0 %v1173_v60, %s2522_s24 }
0x1119   :  { %1294 = vrot.lane.b32.xlu1 %v1174_v61, %s2522_s24 }
0x1183   :  { %v1269_v25 = vpop.permute.xlu0 %1268 }
0x1184   :  { %v1274_v26 = vadd.f32 %v1269_v25, %v1254_v23 }
0x1186   :  { %2387 = vtanh.f32 %v1274_v26 }
0x1187   :  { %v1271_v28 = vpop.permute.xlu1 %1270  ;;  %v1293_v31 = vpop.permute.xlu0 %1292 }
0x1188   :  { %v1275_v2 = vadd.f32 %v1271_v28, %v1255_v27 }
0x118a   :  { %2389 = vtanh.f32 %v1275_v2 }
0x118b   :  { %v1295_v32 = vpop.permute.xlu1 %1294 }
0x1190   :  { %v2388_v29 = vpop.eup %2387 }
0x1191   :  { %1280 = vrot.lane.b32.xlu0 %v2388_v29, %s2521_s23 }
0x1194   :  { %v2390_v30 = vpop.eup %2389 }
0x1195   :  { %1282 = vrot.lane.b32.xlu1 %v2390_v30, %s2521_s23  ;;  %1314 = vrot.lane.b32.xlu0 %v1244_v62, %s2520_s22 }
0x1199   :  { %1316 = vrot.lane.b32.xlu1 %v1245_v63, %s2520_s22 }
0x1203   :  { %v1281_v33 = vpop.permute.xlu0 %1280 }
0x1204   :  { %v1286_v34 = vmul.f32 %v1281_v33, %v1242_v15 }
0x1206   :  { %v1298_v35 = vsel %vm1288_vm4, %v1286_v34, %v1293_v31 }
0x1207   :  { %v1283_v36 = vpop.permute.xlu1 %1282  ;;  %1302 = vrot.lane.b32.xlu0 %v1298_v35, %s2520_s22  ;;  %v1315_v37 = vpop.permute.xlu0 %1314 }
0x1208   :  { %v1287_v38 = vmul.f32 %v1283_v36, %v1243_v19  ;;  %v1320_v40 = vsel %vm1288_vm4, %v1274_v26, %v1315_v37 }
0x120a   :  { %v1299_v39 = vsel %vm1289_vm5, %v1287_v38, %v1295_v32 }
0x120b   :  { %1304 = vrot.lane.b32.xlu1 %v1299_v39, %s2520_s22  ;;  %v1317_v41 = vpop.permute.xlu1 %1316  ;;  %1324 = vrot.lane.b32.xlu0 %v1320_v40, %s2522_s24 }
0x120c   :  { %v1321_v42 = vsel %vm1289_vm5, %v1275_v2, %v1317_v41 }
0x120f   :  { %1326 = vrot.lane.b32.xlu1 %v1321_v42, %s2522_s24 }
0x1279   :  { %v1303_v43 = vpop.permute.xlu0 %1302 }
0x127a   :  { %1308 = vst.msk [vmem:[#allocation3] sm:$0xff] %vm55_vm0, %v1303_v43 }
0x127d   :  { %v1305_v44 = vpop.permute.xlu1 %1304  ;;  %v1325_v45 = vpop.permute.xlu0 %1324 }
0x127e   :  { %1309 = vst.msk [vmem:[#allocation3 + $0x8] sm:$0xff] %vm55_vm0, %v1305_v44  ;;  %1330 = vst.msk [vmem:[#allocation4] sm:$0xff] %vm55_vm0, %v1325_v45 }
0x1281   :  { %v1327_v46 = vpop.permute.xlu1 %1326 }
0x1282   :  { %1331 = vst.msk [vmem:[#allocation4 + $0x8] sm:$0xff] %vm55_vm0, %v1327_v46 }
0x1283 PF:  { %1334 = sbr.rel (%p2034_p6) target bundleno = 5460 (0x1554), region = 85  ;;  %v2391_v47 = vld [vmem:[%s2998_s4] sm:$0xff] (!%p2034_p6)   ;;  %v2523_v48 = vmov (!%p2034_p6), 0.0   ;;  %v2392_v49 = vld [vmem:[%s2998_s4 + $0x8] sm:$0xff] (!%p2034_p6)   ;;  %vm2524_vm6 = vmmov (!%p2034_p6), 0   ;;  %s2525_s6 = smov (!%p2034_p6), 32  }
0x1284   :  { %2230 = vmatprep.subr.bf16.mxu0 (!%p2034_p6), %v2523_v48  ;;  %2234 = vmatprep.mubr.msk.bf16.mxu0 (!%p2034_p6), %vm2524_vm6, %v2523_v48  ;;  %v1338_v50 = vld [vmem:[#allocation3] sm:$0xff] (!%p2034_p6)  ;;  %v1337_v57 = vld [vmem:[#allocation2 + $0x48] sm:$0xff] (!%p2034_p6)  ;;  %s2526_s30 = smov (!%p2034_p6), 64   ;;  %s2527_s8 = smov (!%p2034_p6), 96   ;;  %vm1453_vm7 = vcmp.gt.s32.totalorder (!%p2034_p6), %v2622_v5, 4  ;;  %vm1454_vm8 = vcmp.gt.s32.totalorder (!%p2034_p6), %v2624_v6, 4 }
0x1285   :  { %2231 = vmatpush3.bf16.msra.mxu0 (!%p2034_p6), %v2391_v47  ;;  %v1339_v51 = vld [vmem:[#allocation3 + $0x8] sm:$0xff] (!%p2034_p6)  ;;  %v1409_v52 = vld [vmem:[#allocation4] sm:$0xff] (!%p2034_p6)  ;;  %v1336_v55 = vld [vmem:[#allocation2 + $0x40] sm:$0xff] (!%p2034_p6) }
0x1286   :  { %2232 = vmatprep.subr.bf16.mxu0 (!%p2034_p6), %v2523_v48  ;;  %1413 = vrot.lane.b32.xlu1 (!%p2034_p6), %v1409_v52, %s2525_s6  ;;  %v1340_v54 = vpack.c.bf16 (!%p2034_p6), %v1339_v51, %v1338_v50 }
0x1289   :  { %v1410_v53 = vld [vmem:[#allocation4 + $0x8] sm:$0xff] (!%p2034_p6)  ;;  %2233 = vmatpush3.bf16.msra.mxu0 (!%p2034_p6), %v2392_v49 }
0x128a   :  { %1415 = vrot.lane.b32.xlu1 %v1410_v53, %s2525_s6 }
0x128c   :  { %2235 = vmatmul.mubr.msk.bf16.vlgmr.msra.gmra.mrb[0].mxu0 %vm55_vm0, %v1340_v54 }
0x12f8   :  { %v1414_v12 = vpop.permute.xlu1 %1413 }
0x12fc   :  { %v1416_v14 = vpop.permute.xlu1 %1415 }
0x135f   :  { %v1394_v56 = vpop.f32.mrb[0].mxu0 }
0x1360   :  { %v1401_v58 = vadd.f32 %v1394_v56, %v1336_v55  ;;  %v2236_v59 = vpop.f32.mrb[1].mxu0 }
0x1361   :  { %v1397_v60 = vpop.f32.mrb[2].mxu0 }
0x1362   :  { %2393 = vtanh.f32 %v1401_v58  ;;  %v1402_v61 = vadd.f32 %v1397_v60, %v1337_v57  ;;  %v2237_v62 = vpop.f32.mrb[3].mxu0 }
0x1364   :  { %2395 = vtanh.f32 %v1402_v61 }
0x136c   :  { %v2394_v63 = vpop.eup %2393 }
0x136d   :  { %1423 = vrot.lane.b32.xlu0 %v2394_v63, %s2526_s30  ;;  %v1405_v1 = vmul.f32 0.5, %v2394_v63 }
0x136e   :  { %v2396_v0 = vpop.eup %2395 }
0x136f   :  { %v1407_v3 = vadd.f32 0.5, %v1405_v1  ;;  %v1406_v4 = vmul.f32 0.5, %v2396_v0 }
0x1371   :  { %1425 = vrot.lane.b32.xlu0 %v2396_v0, %s2526_s30  ;;  %v1408_v9 = vadd.f32 0.5, %v1406_v4  ;;  %v1419_v13 = vmul.f32 %v1414_v12, %v1407_v3 }
0x1373   :  { %v1420_v17 = vmul.f32 %v1416_v14, %v1408_v9 }
0x13df   :  { %v1424_v7 = vpop.permute.xlu0 %1423 }
0x13e0   :  { %v1429_v8 = vmul.f32 %v1424_v7, %v1407_v3 }
0x13e2   :  { %1433 = vrot.lane.b32.xlu0 %v1429_v8, %s2525_s6 }
0x13e3   :  { %v1426_v10 = vpop.permute.xlu0 %1425 }
0x13e4   :  { %v1430_v11 = vmul.f32 %v1426_v10, %v1408_v9 }
0x13e6   :  { %1435 = vrot.lane.b32.xlu1 %v1430_v11, %s2525_s6  ;;  %1457 = vrot.lane.b32.xlu0 %v1338_v50, %s2527_s8 }
0x13ea   :  { %1459 = vrot.lane.b32.xlu1 %v1339_v51, %s2527_s8 }
0x1454   :  { %v1434_v15 = vpop.permute.xlu0 %1433 }
0x1455   :  { %v1439_v16 = vadd.f32 %v1434_v15, %v1419_v13 }
0x1457   :  { %2397 = vtanh.f32 %v1439_v16 }
0x1458   :  { %v1436_v18 = vpop.permute.xlu1 %1435  ;;  %v1458_v22 = vpop.permute.xlu0 %1457 }
0x1459   :  { %v1440_v19 = vadd.f32 %v1436_v18, %v1420_v17 }
0x145b   :  { %2399 = vtanh.f32 %v1440_v19 }
0x145c   :  { %v1460_v23 = vpop.permute.xlu1 %1459 }
0x1461   :  { %v2398_v20 = vpop.eup %2397 }
0x1462   :  { %1445 = vrot.lane.b32.xlu0 %v2398_v20, %s2526_s30 }
0x1465   :  { %v2400_v21 = vpop.eup %2399 }
0x1466   :  { %1447 = vrot.lane.b32.xlu1 %v2400_v21, %s2526_s30  ;;  %1479 = vrot.lane.b32.xlu0 %v1409_v52, %s2525_s6 }
0x146a   :  { %1481 = vrot.lane.b32.xlu1 %v1410_v53, %s2525_s6 }
0x14d4   :  { %v1446_v24 = vpop.permute.xlu0 %1445 }
0x14d5   :  { %v1451_v25 = vmul.f32 %v1446_v24, %v1407_v3 }
0x14d7   :  { %v1463_v26 = vsel %vm1453_vm7, %v1451_v25, %v1458_v22 }
0x14d8   :  { %v1448_v27 = vpop.permute.xlu1 %1447  ;;  %1467 = vrot.lane.b32.xlu0 %v1463_v26, %s2525_s6  ;;  %v1480_v28 = vpop.permute.xlu0 %1479 }
0x14d9   :  { %v1452_v2 = vmul.f32 %v1448_v27, %v1408_v9  ;;  %v1485_v30 = vsel %vm1453_vm7, %v1439_v16, %v1480_v28 }
0x14db   :  { %v1464_v29 = vsel %vm1454_vm8, %v1452_v2, %v1460_v23 }
0x14dc   :  { %1469 = vrot.lane.b32.xlu1 %v1464_v29, %s2525_s6  ;;  %v1482_v31 = vpop.permute.xlu1 %1481  ;;  %1489 = vrot.lane.b32.xlu0 %v1485_v30, %s2527_s8 }
0x14dd   :  { %v1486_v32 = vsel %vm1454_vm8, %v1440_v19, %v1482_v31 }
0x14e0   :  { %1491 = vrot.lane.b32.xlu1 %v1486_v32, %s2527_s8 }
0x154a   :  { %v1468_v33 = vpop.permute.xlu0 %1467 }
0x154b   :  { %1473 = vst.msk [vmem:[#allocation3] sm:$0xff] %vm55_vm0, %v1468_v33 }
0x154e   :  { %v1470_v34 = vpop.permute.xlu1 %1469  ;;  %v1490_v35 = vpop.permute.xlu0 %1489 }
0x154f   :  { %1474 = vst.msk [vmem:[#allocation3 + $0x8] sm:$0xff] %vm55_vm0, %v1470_v34  ;;  %1495 = vst.msk [vmem:[#allocation4] sm:$0xff] %vm55_vm0, %v1490_v35 }
0x1552   :  { %v1492_v36 = vpop.permute.xlu1 %1491 }
0x1553   :  { %1496 = vst.msk [vmem:[#allocation4 + $0x8] sm:$0xff] %vm55_vm0, %v1492_v36 }
0x1554 PF:  { %1499 = sbr.rel (%p2039_p7) target bundleno = 6181 (0x1825), region = 89  ;;  %v2401_v37 = vld [vmem:[%s2998_s4] sm:$0xff] (!%p2039_p7)   ;;  %v2528_v38 = vmov (!%p2039_p7), 0.0   ;;  %v2402_v39 = vld [vmem:[%s2998_s4 + $0x8] sm:$0xff] (!%p2039_p7)   ;;  %vm2529_vm9 = vmmov (!%p2039_p7), 0   ;;  %s2530_s14 = smov (!%p2039_p7), 32  }
0x1555   :  { %2238 = vmatprep.subr.bf16.mxu0 (!%p2039_p7), %v2528_v38  ;;  %2242 = vmatprep.mubr.msk.bf16.mxu0 (!%p2039_p7), %vm2529_vm9, %v2528_v38  ;;  %v1503_v40 = vld [vmem:[#allocation3] sm:$0xff] (!%p2039_p7)  ;;  %v1501_v45 = vld [vmem:[#allocation2 + $0x50] sm:$0xff] (!%p2039_p7)  ;;  %v1502_v47 = vld [vmem:[#allocation2 + $0x58] sm:$0xff] (!%p2039_p7)  ;;  %s2531_s2 = smov (!%p2039_p7), 64   ;;  %s2532_s15 = smov (!%p2039_p7), 96   ;;  %vm1618_vm10 = vcmp.gt.s32.totalorder (!%p2039_p7), %v2622_v5, 5 }
0x1556   :  { %2239 = vmatpush3.bf16.msra.mxu0 (!%p2039_p7), %v2401_v37  ;;  %v1504_v41 = vld [vmem:[#allocation3 + $0x8] sm:$0xff] (!%p2039_p7)  ;;  %v1574_v42 = vld [vmem:[#allocation4] sm:$0xff] (!%p2039_p7)  ;;  %vm1619_vm11 = vcmp.gt.s32.totalorder (!%p2039_p7), %v2624_v6, 5 }
0x1557   :  { %2240 = vmatprep.subr.bf16.mxu0 (!%p2039_p7), %v2528_v38  ;;  %1578 = vrot.lane.b32.xlu1 (!%p2039_p7), %v1574_v42, %s2530_s14  ;;  %v1505_v44 = vpack.c.bf16 (!%p2039_p7), %v1504_v41, %v1503_v40 }
0x155a   :  { %v1575_v43 = vld [vmem:[#allocation4 + $0x8] sm:$0xff] (!%p2039_p7)  ;;  %2241 = vmatpush3.bf16.msra.mxu0 (!%p2039_p7), %v2402_v39 }
0x155b   :  { %1580 = vrot.lane.b32.xlu1 %v1575_v43, %s2530_s14 }
0x155d   :  { %2243 = vmatmul.mubr.msk.bf16.vlgmr.msra.gmra.mrb[0].mxu0 %vm55_vm0, %v1505_v44 }
0x15c9   :  { %v1579_v63 = vpop.permute.xlu1 %1578 }
0x15cd   :  { %v1581_v1 = vpop.permute.xlu1 %1580 }
0x1630   :  { %v1559_v46 = vpop.f32.mrb[0].mxu0 }
0x1631   :  { %v1566_v48 = vadd.f32 %v1559_v46, %v1501_v45  ;;  %v2244_v49 = vpop.f32.mrb[1].mxu0 }
0x1632   :  { %v1562_v50 = vpop.f32.mrb[2].mxu0 }
0x1633   :  { %2403 = vtanh.f32 %v1566_v48  ;;  %v1567_v51 = vadd.f32 %v1562_v50, %v1502_v47  ;;  %v2245_v52 = vpop.f32.mrb[3].mxu0 }
0x1635   :  { %2405 = vtanh.f32 %v1567_v51 }
0x163d   :  { %v2404_v53 = vpop.eup %2403 }
0x163e   :  { %1588 = vrot.lane.b32.xlu0 %v2404_v53, %s2531_s2  ;;  %v1570_v55 = vmul.f32 0.5, %v2404_v53 }
0x163f   :  { %v2406_v54 = vpop.eup %2405 }
0x1640   :  { %v1572_v56 = vadd.f32 0.5, %v1570_v55  ;;  %v1571_v57 = vmul.f32 0.5, %v2406_v54 }
0x1642   :  { %1590 = vrot.lane.b32.xlu0 %v2406_v54, %s2531_s2  ;;  %v1573_v60 = vadd.f32 0.5, %v1571_v57  ;;  %v1584_v0 = vmul.f32 %v1579_v63, %v1572_v56 }
0x1644   :  { %v1585_v7 = vmul.f32 %v1581_v1, %v1573_v60 }
0x16b0   :  { %v1589_v58 = vpop.permute.xlu0 %1588 }
0x16b1   :  { %v1594_v59 = vmul.f32 %v1589_v58, %v1572_v56 }
0x16b3   :  { %1598 = vrot.lane.b32.xlu0 %v1594_v59, %s2530_s14 }
0x16b4   :  { %v1591_v61 = vpop.permute.xlu0 %1590 }
0x16b5   :  { %v1595_v62 = vmul.f32 %v1591_v61, %v1573_v60 }
0x16b7   :  { %1600 = vrot.lane.b32.xlu1 %v1595_v62, %s2530_s14  ;;  %1622 = vrot.lane.b32.xlu0 %v1503_v40, %s2532_s15 }
0x16bb   :  { %1624 = vrot.lane.b32.xlu1 %v1504_v41, %s2532_s15 }
0x1725   :  { %v1599_v3 = vpop.permute.xlu0 %1598 }
0x1726   :  { %v1604_v4 = vadd.f32 %v1599_v3, %v1584_v0 }
0x1728   :  { %2407 = vtanh.f32 %v1604_v4 }
0x1729   :  { %v1601_v8 = vpop.permute.xlu1 %1600  ;;  %v1623_v12 = vpop.permute.xlu0 %1622 }
0x172a   :  { %v1605_v9 = vadd.f32 %v1601_v8, %v1585_v7 }
0x172c   :  { %2409 = vtanh.f32 %v1605_v9 }
0x172d   :  { %v1625_v13 = vpop.permute.xlu1 %1624 }
0x1732   :  { %v2408_v10 = vpop.eup %2407 }
0x1733   :  { %1610 = vrot.lane.b32.xlu0 %v2408_v10, %s2531_s2 }
0x1736   :  { %v2410_v11 = vpop.eup %2409 }
0x1737   :  { %1612 = vrot.lane.b32.xlu1 %v2410_v11, %s2531_s2  ;;  %1644 = vrot.lane.b32.xlu0 %v1574_v42, %s2530_s14 }
0x173b   :  { %1646 = vrot.lane.b32.xlu1 %v1575_v43, %s2530_s14 }
0x17a5   :  { %v1611_v14 = vpop.permute.xlu0 %1610 }
0x17a6   :  { %v1616_v15 = vmul.f32 %v1611_v14, %v1572_v56 }
0x17a8   :  { %v1628_v16 = vsel %vm1618_vm10, %v1616_v15, %v1623_v12 }
0x17a9   :  { %v1613_v17 = vpop.permute.xlu1 %1612  ;;  %1632 = vrot.lane.b32.xlu0 %v1628_v16, %s2530_s14  ;;  %v1645_v18 = vpop.permute.xlu0 %1644 }
0x17aa   :  { %v1617_v19 = vmul.f32 %v1613_v17, %v1573_v60  ;;  %v1650_v21 = vsel %vm1618_vm10, %v1604_v4, %v1645_v18 }
0x17ac   :  { %v1629_v20 = vsel %vm1619_vm11, %v1617_v19, %v1625_v13 }
0x17ad   :  { %1634 = vrot.lane.b32.xlu1 %v1629_v20, %s2530_s14  ;;  %v1647_v22 = vpop.permute.xlu1 %1646  ;;  %1654 = vrot.lane.b32.xlu0 %v1650_v21, %s2532_s15 }
0x17ae   :  { %v1651_v23 = vsel %vm1619_vm11, %v1605_v9, %v1647_v22 }
0x17b1   :  { %1656 = vrot.lane.b32.xlu1 %v1651_v23, %s2532_s15 }
0x181b   :  { %v1633_v24 = vpop.permute.xlu0 %1632 }
0x181c   :  { %1638 = vst.msk [vmem:[#allocation3] sm:$0xff] %vm55_vm0, %v1633_v24 }
0x181f   :  { %v1635_v25 = vpop.permute.xlu1 %1634  ;;  %v1655_v26 = vpop.permute.xlu0 %1654 }
0x1820   :  { %1639 = vst.msk [vmem:[#allocation3 + $0x8] sm:$0xff] %vm55_vm0, %v1635_v25  ;;  %1660 = vst.msk [vmem:[#allocation4] sm:$0xff] %vm55_vm0, %v1655_v26 }
0x1823   :  { %v1657_v27 = vpop.permute.xlu1 %1656 }
0x1824   :  { %1661 = vst.msk [vmem:[#allocation4 + $0x8] sm:$0xff] %vm55_vm0, %v1657_v27 }
0x1825 PF:  { %1664 = sbr.rel (%p2044_p8) target bundleno = 6902 (0x1af6), region = 93  ;;  %v2411_v28 = vld [vmem:[%s2998_s4] sm:$0xff] (!%p2044_p8)   ;;  %v2533_v2 = vmov (!%p2044_p8), 0.0   ;;  %v2412_v29 = vld [vmem:[%s2998_s4 + $0x8] sm:$0xff] (!%p2044_p8)   ;;  %vm2534_vm12 = vmmov (!%p2044_p8), 0   ;;  %s2535_s21 = smov (!%p2044_p8), 32  }
0x1826   :  { %2246 = vmatprep.subr.bf16.mxu0 (!%p2044_p8), %v2533_v2  ;;  %2250 = vmatprep.mubr.msk.bf16.mxu0 (!%p2044_p8), %vm2534_vm12, %v2533_v2  ;;  %v1668_v30 = vld [vmem:[#allocation3] sm:$0xff] (!%p2044_p8)  ;;  %v1667_v37 = vld [vmem:[#allocation2 + $0x68] sm:$0xff] (!%p2044_p8)  ;;  %s2536_s22 = smov (!%p2044_p8), 64   ;;  %s2537_s23 = smov (!%p2044_p8), 96   ;;  %vm1783_vm13 = vcmp.gt.s32.totalorder (!%p2044_p8), %v2622_v5, 6  ;;  %vm1784_vm14 = vcmp.gt.s32.totalorder (!%p2044_p8), %v2624_v6, 6 }
0x1827   :  { %2247 = vmatpush3.bf16.msra.mxu0 (!%p2044_p8), %v2411_v28  ;;  %v1669_v31 = vld [vmem:[#allocation3 + $0x8] sm:$0xff] (!%p2044_p8)  ;;  %v1739_v32 = vld [vmem:[#allocation4] sm:$0xff] (!%p2044_p8)  ;;  %v1666_v35 = vld [vmem:[#allocation2 + $0x60] sm:$0xff] (!%p2044_p8) }
0x1828   :  { %2248 = vmatprep.subr.bf16.mxu0 (!%p2044_p8), %v2533_v2  ;;  %1743 = vrot.lane.b32.xlu1 (!%p2044_p8), %v1739_v32, %s2535_s21  ;;  %v1670_v34 = vpack.c.bf16 (!%p2044_p8), %v1669_v31, %v1668_v30 }
0x182b   :  { %v1740_v33 = vld [vmem:[#allocation4 + $0x8] sm:$0xff] (!%p2044_p8)  ;;  %2249 = vmatpush3.bf16.msra.mxu0 (!%p2044_p8), %v2412_v29 }
0x182c   :  { %1745 = vrot.lane.b32.xlu1 %v1740_v33, %s2535_s21 }
0x182e   :  { %2251 = vmatmul.mubr.msk.bf16.vlgmr.msra.gmra.mrb[0].mxu0 %vm55_vm0, %v1670_v34 }
0x189a   :  { %v1744_v53 = vpop.permute.xlu1 %1743 }
0x189e   :  { %v1746_v55 = vpop.permute.xlu1 %1745 }
0x1901   :  { %v1724_v36 = vpop.f32.mrb[0].mxu0 }
0x1902   :  { %v1731_v38 = vadd.f32 %v1724_v36, %v1666_v35  ;;  %v2252_v39 = vpop.f32.mrb[1].mxu0 }
0x1903   :  { %v1727_v40 = vpop.f32.mrb[2].mxu0 }
0x1904   :  { %2413 = vtanh.f32 %v1731_v38  ;;  %v1732_v41 = vadd.f32 %v1727_v40, %v1667_v37  ;;  %v2253_v42 = vpop.f32.mrb[3].mxu0 }
0x1906   :  { %2415 = vtanh.f32 %v1732_v41 }
0x190e   :  { %v2414_v43 = vpop.eup %2413 }
0x190f   :  { %1753 = vrot.lane.b32.xlu0 %v2414_v43, %s2536_s22  ;;  %v1735_v45 = vmul.f32 0.5, %v2414_v43 }
0x1910   :  { %v2416_v44 = vpop.eup %2415 }
0x1911   :  { %v1737_v46 = vadd.f32 0.5, %v1735_v45  ;;  %v1736_v47 = vmul.f32 0.5, %v2416_v44 }
0x1913   :  { %1755 = vrot.lane.b32.xlu0 %v2416_v44, %s2536_s22  ;;  %v1738_v50 = vadd.f32 0.5, %v1736_v47  ;;  %v1749_v54 = vmul.f32 %v1744_v53, %v1737_v46 }
0x1915   :  { %v1750_v58 = vmul.f32 %v1746_v55, %v1738_v50 }
0x1981   :  { %v1754_v48 = vpop.permute.xlu0 %1753 }
0x1982   :  { %v1759_v49 = vmul.f32 %v1754_v48, %v1737_v46 }
0x1984   :  { %1763 = vrot.lane.b32.xlu0 %v1759_v49, %s2535_s21 }
0x1985   :  { %v1756_v51 = vpop.permute.xlu0 %1755 }
0x1986   :  { %v1760_v52 = vmul.f32 %v1756_v51, %v1738_v50 }
0x1988   :  { %1765 = vrot.lane.b32.xlu1 %v1760_v52, %s2535_s21  ;;  %1787 = vrot.lane.b32.xlu0 %v1668_v30, %s2537_s23 }
0x198c   :  { %1789 = vrot.lane.b32.xlu1 %v1669_v31, %s2537_s23 }
0x19f6   :  { %v1764_v56 = vpop.permute.xlu0 %1763 }
0x19f7   :  { %v1769_v57 = vadd.f32 %v1764_v56, %v1749_v54 }
0x19f9   :  { %2417 = vtanh.f32 %v1769_v57 }
0x19fa   :  { %v1766_v59 = vpop.permute.xlu1 %1765  ;;  %v1788_v63 = vpop.permute.xlu0 %1787 }
0x19fb   :  { %v1770_v60 = vadd.f32 %v1766_v59, %v1750_v58 }
0x19fd   :  { %2419 = vtanh.f32 %v1770_v60 }
0x19fe   :  { %v1790_v0 = vpop.permute.xlu1 %1789 }
0x1a03   :  { %v2418_v61 = vpop.eup %2417 }
0x1a04   :  { %1775 = vrot.lane.b32.xlu0 %v2418_v61, %s2536_s22 }
0x1a07   :  { %v2420_v62 = vpop.eup %2419 }
0x1a08   :  { %1777 = vrot.lane.b32.xlu1 %v2420_v62, %s2536_s22  ;;  %1809 = vrot.lane.b32.xlu0 %v1739_v32, %s2535_s21 }
0x1a0c   :  { %1811 = vrot.lane.b32.xlu1 %v1740_v33, %s2535_s21 }
0x1a76   :  { %v1776_v1 = vpop.permute.xlu0 %1775 }
0x1a77   :  { %v1781_v3 = vmul.f32 %v1776_v1, %v1737_v46 }
0x1a79   :  { %v1793_v4 = vsel %vm1783_vm13, %v1781_v3, %v1788_v63 }
0x1a7a   :  { %v1778_v7 = vpop.permute.xlu1 %1777  ;;  %1797 = vrot.lane.b32.xlu0 %v1793_v4, %s2535_s21  ;;  %v1810_v8 = vpop.permute.xlu0 %1809 }
0x1a7b   :  { %v1782_v9 = vmul.f32 %v1778_v7, %v1738_v50  ;;  %v1815_v11 = vsel %vm1783_vm13, %v1769_v57, %v1810_v8 }
0x1a7d   :  { %v1794_v10 = vsel %vm1784_vm14, %v1782_v9, %v1790_v0 }
0x1a7e   :  { %1799 = vrot.lane.b32.xlu1 %v1794_v10, %s2535_s21  ;;  %v1812_v12 = vpop.permute.xlu1 %1811  ;;  %1819 = vrot.lane.b32.xlu0 %v1815_v11, %s2537_s23 }
0x1a7f   :  { %v1816_v13 = vsel %vm1784_vm14, %v1770_v60, %v1812_v12 }
0x1a82   :  { %1821 = vrot.lane.b32.xlu1 %v1816_v13, %s2537_s23 }
0x1aec   :  { %v1798_v14 = vpop.permute.xlu0 %1797 }
0x1aed   :  { %1803 = vst.msk [vmem:[#allocation3] sm:$0xff] %vm55_vm0, %v1798_v14 }
0x1af0   :  { %v1800_v15 = vpop.permute.xlu1 %1799  ;;  %v1820_v16 = vpop.permute.xlu0 %1819 }
0x1af1   :  { %1804 = vst.msk [vmem:[#allocation3 + $0x8] sm:$0xff] %vm55_vm0, %v1800_v15  ;;  %1825 = vst.msk [vmem:[#allocation4] sm:$0xff] %vm55_vm0, %v1820_v16 }
0x1af4   :  { %v1822_v17 = vpop.permute.xlu1 %1821 }
0x1af5   :  { %1826 = vst.msk [vmem:[#allocation4 + $0x8] sm:$0xff] %vm55_vm0, %v1822_v17 }
0x1af6 PF:  { %1829 = sbr.rel (%p2049_p9) target bundleno = 7623 (0x1dc7), region = 97  ;;  %v2421_v18 = vld [vmem:[%s2998_s4] sm:$0xff] (!%p2049_p9)   ;;  %v2538_v19 = vmov (!%p2049_p9), 0.0   ;;  %v2422_v20 = vld [vmem:[%s2998_s4 + $0x8] sm:$0xff] (!%p2049_p9)   ;;  %vm2539_vm15 = vmmov (!%p2049_p9), 0   ;;  %s2540_s29 = smov (!%p2049_p9), 32  }
0x1af7   :  { %2254 = vmatprep.subr.bf16.mxu0 (!%p2049_p9), %v2538_v19  ;;  %2258 = vmatprep.mubr.msk.bf16.mxu0 (!%p2049_p9), %vm2539_vm15, %v2538_v19  ;;  %v1833_v21 = vld [vmem:[#allocation3] sm:$0xff] (!%p2049_p9)  ;;  %v1831_v26 = vld [vmem:[#allocation2 + $0x70] sm:$0xff] (!%p2049_p9)  ;;  %v1832_v28 = vld [vmem:[#allocation2 + $0x78] sm:$0xff] (!%p2049_p9)  ;;  %s2541_s0 = smov (!%p2049_p9), 64   ;;  %s2542_s4 = smov (!%p2049_p9), 96   ;;  %vm1948_vm1 = vcmp.gt.s32.totalorder (!%p2049_p9), %v2622_v5, 7 }
0x1af8   :  { %2255 = vmatpush3.bf16.msra.mxu0 (!%p2049_p9), %v2421_v18  ;;  %v1834_v22 = vld [vmem:[#allocation3 + $0x8] sm:$0xff] (!%p2049_p9)  ;;  %v1904_v23 = vld [vmem:[#allocation4] sm:$0xff] (!%p2049_p9)  ;;  %vm1949_vm2 = vcmp.gt.s32.totalorder (!%p2049_p9), %v2624_v6, 7 }
0x1af9   :  { %2256 = vmatprep.subr.bf16.mxu0 (!%p2049_p9), %v2538_v19  ;;  %1908 = vrot.lane.b32.xlu1 (!%p2049_p9), %v1904_v23, %s2540_s29  ;;  %v1835_v25 = vpack.c.bf16 (!%p2049_p9), %v1834_v22, %v1833_v21 }
0x1afc   :  { %v1905_v24 = vld [vmem:[#allocation4 + $0x8] sm:$0xff] (!%p2049_p9)  ;;  %2257 = vmatpush3.bf16.msra.mxu0 (!%p2049_p9), %v2422_v20 }
0x1afd   :  { %1910 = vrot.lane.b32.xlu1 %v1905_v24, %s2540_s29 }
0x1aff   :  { %2259 = vmatmul.mubr.msk.bf16.vlgmr.msra.gmra.mrb[0].mxu0 %vm55_vm0, %v1835_v25 }
0x1b6b   :  { %v1909_v43 = vpop.permute.xlu1 %1908 }
0x1b6f   :  { %v1911_v45 = vpop.permute.xlu1 %1910 }
0x1bd2   :  { %v1889_v27 = vpop.f32.mrb[0].mxu0 }
0x1bd3   :  { %v1896_v2 = vadd.f32 %v1889_v27, %v1831_v26  ;;  %v2260_v29 = vpop.f32.mrb[1].mxu0 }
0x1bd4   :  { %v1892_v30 = vpop.f32.mrb[2].mxu0 }
0x1bd5   :  { %2423 = vtanh.f32 %v1896_v2  ;;  %v1897_v31 = vadd.f32 %v1892_v30, %v1832_v28  ;;  %v2261_v32 = vpop.f32.mrb[3].mxu0 }
0x1bd7   :  { %2425 = vtanh.f32 %v1897_v31 }
0x1bdf   :  { %v2424_v33 = vpop.eup %2423 }
0x1be0   :  { %1918 = vrot.lane.b32.xlu0 %v2424_v33, %s2541_s0  ;;  %v1900_v35 = vmul.f32 0.5, %v2424_v33 }
0x1be1   :  { %v2426_v34 = vpop.eup %2425 }
0x1be2   :  { %v1902_v36 = vadd.f32 0.5, %v1900_v35  ;;  %v1901_v37 = vmul.f32 0.5, %v2426_v34 }
0x1be4   :  { %1920 = vrot.lane.b32.xlu0 %v2426_v34, %s2541_s0  ;;  %v1903_v40 = vadd.f32 0.5, %v1901_v37  ;;  %v1914_v44 = vmul.f32 %v1909_v43, %v1902_v36 }
0x1be6   :  { %v1915_v48 = vmul.f32 %v1911_v45, %v1903_v40 }
0x1c52   :  { %v1919_v38 = vpop.permute.xlu0 %1918 }
0x1c53   :  { %v1924_v39 = vmul.f32 %v1919_v38, %v1902_v36 }
0x1c55   :  { %1928 = vrot.lane.b32.xlu0 %v1924_v39, %s2540_s29 }
0x1c56   :  { %v1921_v41 = vpop.permute.xlu0 %1920 }
0x1c57   :  { %v1925_v42 = vmul.f32 %v1921_v41, %v1903_v40 }
0x1c59   :  { %1930 = vrot.lane.b32.xlu1 %v1925_v42, %s2540_s29  ;;  %1952 = vrot.lane.b32.xlu0 %v1833_v21, %s2542_s4 }
0x1c5d   :  { %1954 = vrot.lane.b32.xlu1 %v1834_v22, %s2542_s4 }
0x1cc7   :  { %v1929_v46 = vpop.permute.xlu0 %1928 }
0x1cc8   :  { %v1934_v47 = vadd.f32 %v1929_v46, %v1914_v44 }
0x1cca   :  { %2427 = vtanh.f32 %v1934_v47 }
0x1ccb   :  { %v1931_v49 = vpop.permute.xlu1 %1930  ;;  %v1953_v53 = vpop.permute.xlu0 %1952 }
0x1ccc   :  { %v1935_v50 = vadd.f32 %v1931_v49, %v1915_v48 }
0x1cce   :  { %2429 = vtanh.f32 %v1935_v50 }
0x1ccf   :  { %v1955_v54 = vpop.permute.xlu1 %1954 }
0x1cd4   :  { %v2428_v51 = vpop.eup %2427 }
0x1cd5   :  { %1940 = vrot.lane.b32.xlu0 %v2428_v51, %s2541_s0 }
0x1cd8   :  { %v2430_v52 = vpop.eup %2429 }
0x1cd9   :  { %1942 = vrot.lane.b32.xlu1 %v2430_v52, %s2541_s0  ;;  %1974 = vrot.lane.b32.xlu0 %v1904_v23, %s2540_s29 }
0x1cdd   :  { %1976 = vrot.lane.b32.xlu1 %v1905_v24, %s2540_s29 }
0x1d47   :  { %v1941_v55 = vpop.permute.xlu0 %1940 }
0x1d48   :  { %v1946_v56 = vmul.f32 %v1941_v55, %v1902_v36 }
0x1d4a   :  { %v1958_v57 = vsel %vm1948_vm1, %v1946_v56, %v1953_v53 }
0x1d4b   :  { %v1943_v58 = vpop.permute.xlu1 %1942  ;;  %1962 = vrot.lane.b32.xlu0 %v1958_v57, %s2540_s29  ;;  %v1975_v59 = vpop.permute.xlu0 %1974 }
0x1d4c   :  { %v1947_v60 = vmul.f32 %v1943_v58, %v1903_v40  ;;  %v1980_v62 = vsel %vm1948_vm1, %v1934_v47, %v1975_v59 }
0x1d4e   :  { %v1959_v61 = vsel %vm1949_vm2, %v1947_v60, %v1955_v54 }
0x1d4f   :  { %1964 = vrot.lane.b32.xlu1 %v1959_v61, %s2540_s29  ;;  %v1977_v63 = vpop.permute.xlu1 %1976  ;;  %1984 = vrot.lane.b32.xlu0 %v1980_v62, %s2542_s4 }
0x1d50   :  { %v1981_v0 = vsel %vm1949_vm2, %v1935_v50, %v1977_v63 }
0x1d53   :  { %1986 = vrot.lane.b32.xlu1 %v1981_v0, %s2542_s4 }
0x1dbd   :  { %v1963_v5 = vpop.permute.xlu0 %1962 }
0x1dbe   :  { %1968 = vst.msk [vmem:[#allocation3] sm:$0xff] %vm55_vm0, %v1963_v5 }
0x1dc1   :  { %v1965_v1 = vpop.permute.xlu1 %1964  ;;  %v1985_v3 = vpop.permute.xlu0 %1984 }
0x1dc2   :  { %1969 = vst.msk [vmem:[#allocation3 + $0x8] sm:$0xff] %vm55_vm0, %v1965_v1  ;;  %1990 = vst.msk [vmem:[#allocation4] sm:$0xff] %vm55_vm0, %v1985_v3 }
0x1dc5   :  { %v1987_v6 = vpop.permute.xlu1 %1986 }
0x1dc6   :  { %1991 = vst.msk [vmem:[#allocation4 + $0x8] sm:$0xff] %vm55_vm0, %v1987_v6 }
0x1dc7 PF:  { %v1992_v4 = vld [vmem:[#allocation3] sm:$0xff]  ;;  %v1995_v10 = vld [vmem:[#allocation9 + $0x8] sm:$0xff]  ;;  %vm2004_vm3 = vcmask 7168  }
0x1dc8   :  { %v1994_v7 = vld [vmem:[#allocation9] sm:$0xff] }
0x1dc9   :  { %v1993_v8 = vld [vmem:[#allocation3 + $0x8] sm:$0xff]  ;;  %v1996_v9 = vmul.f32 %v1994_v7, %v1992_v4 }
0x1dca   :  { %v1997_v11 = vmul.f32 %v1995_v10, %v1993_v8 }
0x1dcb   :  { %v1998_v12 = vsel %vm55_vm0, %v1996_v9, 0.0 }
0x1dcc   :  { %1999 = vadd.xlane.f32.xlu0 %v1998_v12  ;;  %v2001_v13 = vsel %vm55_vm0, %v1997_v11, 0.0 }
0x1dd0   :  { %2002 = vadd.xlane.f32.xlu0 %v2001_v13 }
0x1e59   :  { %v2000_v14 = vpop.xlane.xlu0 %1999 }
0x1e5a   :  { %2005 = vst.msk [vmem:[%s3001_s7] sm:$0xff] %vm2004_vm3, %v2000_v14 }
0x1e5d   :  { %v2003_v15 = vpop.xlane.xlu0 %2002 }
0x1e5e   :  { %2006 = vst.msk [vmem:[%s3001_s7 + $0x8] sm:$0xff] %vm2004_vm3, %v2003_v15 }
0x1e5f   :  { %2011 = vsyncpa [#allocation8], 1 }
0x1e60   :  { %2012 = vsyncpa [#allocation10], 1 }

</bundles_post_ra>
